<compile_context>
chip_gen: v6e
topology: v6e:2x2x1
jax: 0.10.0
libtpu: 0.0.40
codegen_flags: <defaults>
</compile_context>

<pallas_src>
import numpy as np
import jax
import jax.numpy as jnp
from jax.experimental import pallas as pl
from jax.experimental.pallas import tpu as pltpu

OUT_HW = 18          # PPM hard-codes F.interpolate(..., (18, 18), align_corners=True)
N_PIX = OUT_HW * OUT_HW
BN_EPS = 1e-5
LANE = 128           # lane width; each branch gets its own 128-lane block in pooled layout


# ----------------------------- spatial operator matrices -----------------------------
def adaptive_pool_matrix(out_size: int, in_size: int) -> np.ndarray:
    """P such that P @ v == AdaptiveAvgPool1d(out_size)(v) (PyTorch bin semantics)."""
    P = np.zeros((out_size, in_size), np.float32)
    for i in range(out_size):
        start = (i * in_size) // out_size
        end = -((-(i + 1) * in_size) // out_size)      # ceil((i+1)*in/out)
        P[i, start:end] = 1.0 / (end - start)
    return P


def bilinear_matrix(out_size: int, in_size: int) -> np.ndarray:
    """U such that U @ v == 1-D linear resize with align_corners=True."""
    U = np.zeros((out_size, in_size), np.float32)
    if in_size == 1:
        U[:, 0] = 1.0
        return U
    scale = (in_size - 1) / (out_size - 1)
    for p in range(out_size):
        src = p * scale
        i0 = min(int(np.floor(src)), in_size - 1)
        i1 = min(i0 + 1, in_size - 1)
        w1 = src - i0
        U[p, i0] += 1.0 - w1
        U[p, i1] += w1
    return U


# ----------------------------------- Pallas kernel -----------------------------------
def make_ppm_kernel(c_in, nb, n_ch_tiles, ch_tile, compute_dtype):
    p_pad = nb * LANE

    def epilogue(pooled_f32, conv_wT, bn_shift, mask, kinterpT, merge_wT, merge_shift,
                 out_ref):
        # stacked 1x1 conv (BN scale pre-folded); one K=C matmul for all branches
        y = jnp.dot(conv_wT, pooled_f32.astype(compute_dtype),
                    preferred_element_type=jnp.float32)                 # (C, nb*128) f32
        # BN shift + ReLU in f32, then block-diagonal mask kills cross-branch blocks
        y = jnp.maximum(y + bn_shift, 0.0) * mask
        # bilinear resize to 18x18 for all branches in one matmul (bin==1 row == ones)
        z = jnp.dot(y.astype(compute_dtype), kinterpT,
                    preferred_element_type=jnp.float32)                 # (C, 324) f32
        # merge 1x1 conv (+ folded merge-BN scale) in a single K=C matmul, single store
        out = jnp.dot(merge_wT, z.astype(compute_dtype),
                      preferred_element_type=jnp.float32)               # (C, 324) f32
        out_ref[0] = out + merge_shift

    if n_ch_tiles == 1:
        # fast path: whole channel dim in one tile, no scratch, no pl.when
        def kernel(x_ref, kpoolT_ref, conv_wT_ref, bn_shift_ref, mask_ref,
                   kinterpT_ref, merge_wT_ref, merge_shift_ref, out_ref):
            x = x_ref[0].astype(compute_dtype)                          # cast under the DMA
            pooled = jnp.dot(x, kpoolT_ref[...],
                             preferred_element_type=jnp.float32)        # (C, nb*128) f32
            epilogue(pooled, conv_wT_ref[...], bn_shift_ref[...], mask_ref[...],
                     kinterpT_ref[...], merge_wT_ref[...], merge_shift_ref[...], out_ref)
        return kernel

    # tiled path: stream channel tiles, stage pooled rows, finalize on the last step
    def kernel(x_ref, kpoolT_ref, conv_wT_ref, bn_shift_ref, mask_ref,
               kinterpT_ref, merge_wT_ref, merge_shift_ref, out_ref, pooled_ref):
        k = pl.program_id(1)
        x = x_ref[0].astype(compute_dtype)                              # (tc, HW)
        pooled_tile = jnp.dot(x, kpoolT_ref[...],
                              preferred_element_type=jnp.float32)       # (tc, nb*128) f32
        row = pl.multiple_of(k * ch_tile, ch_tile)
        pooled_ref[pl.ds(row, ch_tile), :] = pooled_tile                # lane-dense store

        @pl.when(k == n_ch_tiles - 1)
        def _finalize():
            epilogue(pooled_ref[...], conv_wT_ref[...], bn_shift_ref[...], mask_ref[...],
                     kinterpT_ref[...], merge_wT_ref[...], merge_shift_ref[...], out_ref)

    return kernel


def _vmem_limit_bytes():
    cap = 64 * 1024 * 1024                       # conservative fallback (fits v7x)
    try:
        cap = int(pltpu.get_tpu_info().vmem_capacity_bytes)
    except Exception:
        pass
    return max(32 * 1024 * 1024, (cap * 3) // 4)


def _default_channel_tile(C, HW, x_itemsize, cdt_itemsize, nb, vmem_budget):
    """Budget-driven channel tile: whole C if the double-buffered input tile fits,
    otherwise the largest multiple-of-8 divisor of C that fits."""
    p_pad = nb * LANE
    resident = ((HW * p_pad + 2 * C * C + p_pad * N_PIX) * cdt_itemsize
                + (C * p_pad + 2 * C) * 4)                 # bf16 weights + f32 mask/shifts
    out_blocks = 2 * C * N_PIX * 4                         # double-buffered output block
    temps = 6 * C * max(p_pad, N_PIX) * 4                  # epilogue temporaries headroom
    free = vmem_budget - resident - out_blocks - temps
    if C % 8 != 0 or free >= 2 * C * HW * x_itemsize:
        return C                                           # single-tile fast path
    free -= C * p_pad * 4                                  # pooled f32 scratch (tiled path)
    cap = max(8, free // (2 * HW * x_itemsize))
    best = 8
    d = 8
    while d <= min(C, cap):
        if C % d == 0:
            best = d
        d += 8
    return best


def ppm_forward(x_nchw, prep, *, channel_tile=None):
    bins = prep["bins"]
    cdt = prep["compute_dtype"]
    nb = len(bins)
    N, C, H, W = x_nchw.shape
    HW = H * W
    p_pad = nb * LANE
    vmem_budget = _vmem_limit_bytes()

    if channel_tile is None:
        channel_tile = _default_channel_tile(C, HW, x_nchw.dtype.itemsize,
                                             jnp.dtype(cdt).itemsize, nb, vmem_budget)
    tc = min(channel_tile, C)
    if tc != C:
        assert C % tc == 0 and tc % 8 == 0, \
            "channel_tile must divide C and be a multiple of 8"
    n_k = C // tc

    # free reshape; keep the native dtype -- the cast happens in-kernel under the DMA
    x = x_nchw.reshape(N, C, HW)

    def resident():
        return pl.BlockSpec(memory_space=pltpu.MemorySpace.VMEM)

    const_inputs = [prep["kpoolT"], prep["conv_wT"], prep["bn_shift"], prep["mask"],
                    prep["kinterpT"], prep["merge_wT"], prep["merge_shift"]]
    const_specs = [resident() for _ in const_inputs]

    kernel = make_ppm_kernel(C, nb, n_k, tc, cdt)

    if n_k == 1:
        grid = (N,)
        in_specs = [pl.BlockSpec((1, C, HW), lambda n: (n, 0, 0))] + const_specs
        out_spec = pl.BlockSpec((1, C, N_PIX), lambda n: (n, 0, 0))
        scratch = []
        dim_sem = ("parallel",)
    else:
        grid = (N, n_k)
        in_specs = [pl.BlockSpec((1, tc, HW), lambda n, k: (n, k, 0))] + const_specs
        out_spec = pl.BlockSpec((1, C, N_PIX), lambda n, k: (n, 0, 0))
        scratch = [pltpu.VMEM((C, p_pad), jnp.float32)]
        dim_sem = ("parallel", "arbitrary")     # keep channel (reduction) axis innermost

    out = pl.pallas_call(
        kernel,
        out_shape=jax.ShapeDtypeStruct((N, C, N_PIX), jnp.float32),
        grid=grid,
        in_specs=in_specs,
        out_specs=out_spec,
        scratch_shapes=scratch,
        compiler_params=pltpu.CompilerParams(
            dimension_semantics=dim_sem,
            vmem_limit_bytes=vmem_budget,
        ),
    )(x, *const_inputs)
    return out.reshape(N, C, OUT_HW, OUT_HW)      # already NCHW


# ------------------------------- parameters (synthetic) -------------------------------
def init_ppm_raw_params(key, in_dim, bins):
    n = len(bins)
    c_out = in_dim // n
    keys = list(jax.random.split(key, 5 * n + 5))
    it = iter(keys)
    branches = []
    for _ in bins:
        branches.append(dict(
            conv_w=0.1 * jax.random.normal(next(it), (in_dim, c_out), jnp.float32),
            gamma=1.0 + 0.1 * jax.random.normal(next(it), (c_out,), jnp.float32),
            beta=0.1 * jax.random.normal(next(it), (c_out,), jnp.float32),
            mean=0.1 * jax.random.normal(next(it), (c_out,), jnp.float32),
            var=1.0 + 0.1 * jnp.abs(jax.random.normal(next(it), (c_out,), jnp.float32)),
        ))
    merge_w = 0.1 * jax.random.normal(next(it), (in_dim, in_dim), jnp.float32)
    return dict(
        bins=tuple(bins), branches=branches, merge_w=merge_w,
        merge_gamma=1.0 + 0.1 * jax.random.normal(next(it), (in_dim,), jnp.float32),
        merge_beta=0.1 * jax.random.normal(next(it), (in_dim,), jnp.float32),
        merge_mean=0.1 * jax.random.normal(next(it), (in_dim,), jnp.float32),
        merge_var=1.0 + 0.1 * jnp.abs(jax.random.normal(next(it), (in_dim,), jnp.float32)),
    )


def prepare_ppm_params(raw, H, W, compute_dtype=jnp.bfloat16):
    """Host-side precompute: fold BN scales into weights, stack branch weights, build the
    lane-padded stacked pooling / interpolation operator matrices and the block-diagonal
    branch mask, cast MXU operands to the compute dtype."""
    bins = raw["bins"]
    nb = len(bins)
    in_dim = raw["merge_w"].shape[0]
    c_out = in_dim // nb
    assert in_dim % nb == 0
    assert max(bins) ** 2 <= LANE, "each branch's b*b must fit one 128-lane block"
    HW = H * W
    p_pad = nb * LANE

    def fold_bn(gamma, beta, mean, var):
        scale = gamma / jnp.sqrt(var + BN_EPS)
        shift = beta - mean * scale
        return scale, shift

    msc, msh = fold_bn(raw["merge_gamma"], raw["merge_beta"],
                       raw["merge_mean"], raw["merge_var"])

    kpoolT = np.zeros((HW, p_pad), np.float32)          # lane-padded stacked pooling op
    kinterpT = np.zeros((p_pad, N_PIX), np.float32)     # row-stacked interpolation op
    conv_wT_rows, shift_rows = [], []
    for i, b in enumerate(bins):
        rb = raw["branches"][i]
        sc, sh = fold_bn(rb["gamma"], rb["beta"], rb["mean"], rb["var"])
        conv_wT_rows.append((rb["conv_w"] * sc[None, :]).T)             # (c_out, C)
        shift_rows.append(sh.reshape(-1, 1))
        kpool = np.kron(adaptive_pool_matrix(b, H), adaptive_pool_matrix(b, W))  # (b*b, HW)
        kpoolT[:, i * LANE:i * LANE + b * b] = kpool.T
        if b == 1:
            kinterpT[i * LANE, :] = 1.0                                 # 1x1 resize = bcast
        else:
            kint = np.kron(bilinear_matrix(OUT_HW, b), bilinear_matrix(OUT_HW, b))
            kinterpT[i * LANE:i * LANE + b * b, :] = kint.T             # (b*b, 324)

    conv_wT = jnp.concatenate(conv_wT_rows, axis=0).astype(compute_dtype)   # (C, C)
    bn_shift = jnp.concatenate(shift_rows, axis=0).astype(jnp.float32)      # (C, 1)
    merge_wT = (raw["merge_w"] * msc[None, :]).T.astype(compute_dtype)      # (C, C)

    mask = np.zeros((in_dim, p_pad), np.float32)        # block-diag branch mask
    for i in range(nb):
        mask[i * c_out:(i + 1) * c_out, i * LANE:(i + 1) * LANE] = 1.0

    return dict(bins=bins, compute_dtype=compute_dtype, c_out=c_out,
                kpoolT=jnp.asarray(kpoolT).astype(compute_dtype),
                conv_wT=conv_wT, bn_shift=bn_shift,
                mask=jnp.asarray(mask),
                kinterpT=jnp.asarray(kinterpT).astype(compute_dtype),
                merge_wT=merge_wT,
                merge_shift=msh.reshape(-1, 1).astype(jnp.float32))


# ----------------------------- plain-JAX reference (check) ----------------------------
def ppm_reference(x_nchw, prep):
    cdt = prep["compute_dtype"]
    bins = prep["bins"]
    nb = len(bins)
    N, C, H, W = x_nchw.shape
    c_out = C // nb
    x = x_nchw.reshape(N, C, H * W).astype(cdt)
    out = jnp.broadcast_to(prep["merge_shift"].reshape(1, C, 1), (N, C, N_PIX))
    out = out.astype(jnp.float32)
    for i, b in enumerate(bins):
        bb = b * b
        kpT = prep["kpoolT"][:, i * LANE:i * LANE + bb]                   # (HW, bb)
        pooled = jnp.einsum("nch,hp->ncp", x, kpT,
                            preferred_element_type=jnp.float32)           # (N, C, bb)
        wT = prep["conv_wT"][i * c_out:(i + 1) * c_out, :]                # (c_out, C)
        sh = prep["bn_shift"][i * c_out:(i + 1) * c_out]                  # (c_out, 1)
        yT = jnp.einsum("oc,ncp->nop", wT, pooled.astype(cdt),
                        preferred_element_type=jnp.float32)
        yT = jnp.maximum(yT + sh[None], 0.0).astype(cdt)
        kiT = prep["kinterpT"][i * LANE:i * LANE + bb, :]                 # (bb, 324)
        zT = jnp.einsum("nop,pq->noq", yT, kiT,
                        preferred_element_type=jnp.float32).astype(cdt)
        mT = prep["merge_wT"][:, i * c_out:(i + 1) * c_out]               # (C, c_out)
        out = out + jnp.einsum("co,noq->ncq", mT, zT,
                               preferred_element_type=jnp.float32)
    return out.reshape(N, C, OUT_HW, OUT_HW)


if __name__ == "__main__":
    key = jax.random.PRNGKey(0)
    in_dim, bins = 128, (1, 2, 3, 6)        # in_dim // len(bins) == 32 channels per branch
    N, H, W = 2, 16, 16
    kp, kx = jax.random.split(key)

    raw = init_ppm_raw_params(kp, in_dim, bins)
    prep = prepare_ppm_params(raw, H, W, compute_dtype=jnp.bfloat16)
    x = jax.random.normal(kx, (N, in_dim, H, W), jnp.float32)   # NCHW f32, like PyTorch

    ref = ppm_reference(x, prep)

    # fast path (default): whole channel dim in one tile, grid=(N,)
    out_fast = jax.block_until_ready(ppm_forward(x, prep))
    assert out_fast.shape == (N, in_dim, OUT_HW, OUT_HW)
    np.testing.assert_allclose(np.asarray(out_fast), np.asarray(ref), rtol=5e-3, atol=5e-3)

    # tiled path: 2 channel tiles -> exercises the pipelined scratch + pl.when finalize
    out_tiled = jax.block_until_ready(ppm_forward(x, prep, channel_tile=64))
    np.testing.assert_allclose(np.asarray(out_tiled), np.asarray(ref), rtol=5e-3, atol=5e-3)

    print("KERNEL_OK")
</pallas_src>

<mosaic_0001>
module attributes {stable_mosaic.version = 11 : i64} {
  func.func @kernel(%arg0: i32, %arg1: memref<1x128x256xf32, #tpu.memory_space<vmem>>, %arg2: memref<256x512xbf16, #tpu.memory_space<vmem>>, %arg3: memref<128x128xbf16, #tpu.memory_space<vmem>>, %arg4: memref<128x1xf32, #tpu.memory_space<vmem>>, %arg5: memref<128x512xf32, #tpu.memory_space<vmem>>, %arg6: memref<512x324xbf16, #tpu.memory_space<vmem>>, %arg7: memref<128x128xbf16, #tpu.memory_space<vmem>>, %arg8: memref<128x1xf32, #tpu.memory_space<vmem>>, %arg9: memref<1x128x324xf32, #tpu.memory_space<vmem>>) attributes {dimension_semantics = [#tpu.dimension_semantics<parallel>], iteration_bounds = array<i64: 2>, scalar_prefetch = 0 : i64, scratch_operands = 0 : i64, tpu.core_type = #tpu.core_type<tc>, window_params = [{transform_indices = @transform_0, window_bounds = array<i64: 1, 128, 256>}, {pipeline_mode = #tpu.pipeline_mode<synchronous>, transform_indices = @transform_1, window_bounds = array<i64: 256, 512>}, {pipeline_mode = #tpu.pipeline_mode<synchronous>, transform_indices = @transform_2, window_bounds = array<i64: 128, 128>}, {pipeline_mode = #tpu.pipeline_mode<synchronous>, transform_indices = @transform_3, window_bounds = array<i64: 128, 1>}, {pipeline_mode = #tpu.pipeline_mode<synchronous>, transform_indices = @transform_4, window_bounds = array<i64: 128, 512>}, {pipeline_mode = #tpu.pipeline_mode<synchronous>, transform_indices = @transform_5, window_bounds = array<i64: 512, 324>}, {pipeline_mode = #tpu.pipeline_mode<synchronous>, transform_indices = @transform_6, window_bounds = array<i64: 128, 128>}, {pipeline_mode = #tpu.pipeline_mode<synchronous>, transform_indices = @transform_7, window_bounds = array<i64: 128, 1>}, {transform_indices = @transform_8, window_bounds = array<i64: 1, 128, 324>}]} {
    %c0 = arith.constant 0 : index
    %c0_0 = arith.constant 0 : index
    %c0_1 = arith.constant 0 : index
    %0 = vector.load %arg1[%c0, %c0_0, %c0_1] : memref<1x128x256xf32, #tpu.memory_space<vmem>>, vector<1x128x256xf32>
    %1 = vector.shape_cast %0 : vector<1x128x256xf32> to vector<128x256xf32>
    %2 = arith.truncf %1 : vector<128x256xf32> to vector<128x256xbf16>
    %c0_2 = arith.constant 0 : index
    %c0_3 = arith.constant 0 : index
    %3 = vector.load %arg2[%c0_2, %c0_3] : memref<256x512xbf16, #tpu.memory_space<vmem>>, vector<256x512xbf16>
    %cst = arith.constant dense<0.000000e+00> : vector<128x512xf32>
    %4 = tpu.matmul %2, %3, %cst {dimension_numbers = #tpu.dot_dimension_numbers<[1], [0], [0], [1], [0, 0, 1, 1], [], []>} : vector<128x256xbf16>, vector<256x512xbf16>, vector<128x512xf32> -> vector<128x512xf32>
    %c0_4 = arith.constant 0 : index
    %c0_5 = arith.constant 0 : index
    %5 = vector.load %arg3[%c0_4, %c0_5] : memref<128x128xbf16, #tpu.memory_space<vmem>>, vector<128x128xbf16>
    %c0_6 = arith.constant 0 : index
    %c0_7 = arith.constant 0 : index
    %6 = vector.load %arg4[%c0_6, %c0_7] : memref<128x1xf32, #tpu.memory_space<vmem>>, vector<128x1xf32>
    %c0_8 = arith.constant 0 : index
    %c0_9 = arith.constant 0 : index
    %7 = vector.load %arg5[%c0_8, %c0_9] : memref<128x512xf32, #tpu.memory_space<vmem>>, vector<128x512xf32>
    %c0_10 = arith.constant 0 : index
    %c0_11 = arith.constant 0 : index
    %8 = vector.load %arg6[%c0_10, %c0_11] : memref<512x324xbf16, #tpu.memory_space<vmem>>, vector<512x324xbf16>
    %c0_12 = arith.constant 0 : index
    %c0_13 = arith.constant 0 : index
    %9 = vector.load %arg7[%c0_12, %c0_13] : memref<128x128xbf16, #tpu.memory_space<vmem>>, vector<128x128xbf16>
    %c0_14 = arith.constant 0 : index
    %c0_15 = arith.constant 0 : index
    %10 = vector.load %arg8[%c0_14, %c0_15] : memref<128x1xf32, #tpu.memory_space<vmem>>, vector<128x1xf32>
    %11 = arith.truncf %4 : vector<128x512xf32> to vector<128x512xbf16>
    %cst_16 = arith.constant dense<0.000000e+00> : vector<128x512xf32>
    %12 = tpu.matmul %5, %11, %cst_16 {dimension_numbers = #tpu.dot_dimension_numbers<[1], [0], [0], [1], [0, 0, 1, 1], [], []>} : vector<128x128xbf16>, vector<128x512xbf16>, vector<128x512xf32> -> vector<128x512xf32>
    %13 = vector.broadcast %6 : vector<128x1xf32> to vector<128x512xf32>
    %14 = arith.addf %12, %13 : vector<128x512xf32>
    %cst_17 = arith.constant 0.000000e+00 : f32
    %15 = vector.broadcast %cst_17 : f32 to vector<128x512xf32>
    %16 = arith.maximumf %14, %15 : vector<128x512xf32>
    %17 = arith.mulf %16, %7 : vector<128x512xf32>
    %18 = arith.truncf %17 : vector<128x512xf32> to vector<128x512xbf16>
    %cst_18 = arith.constant dense<0.000000e+00> : vector<128x324xf32>
    %19 = tpu.matmul %18, %8, %cst_18 {dimension_numbers = #tpu.dot_dimension_numbers<[1], [0], [0], [1], [0, 0, 1, 1], [], []>} : vector<128x512xbf16>, vector<512x324xbf16>, vector<128x324xf32> -> vector<128x324xf32>
    %20 = arith.truncf %19 : vector<128x324xf32> to vector<128x324xbf16>
    %cst_19 = arith.constant dense<0.000000e+00> : vector<128x324xf32>
    %21 = tpu.matmul %9, %20, %cst_19 {dimension_numbers = #tpu.dot_dimension_numbers<[1], [0], [0], [1], [0, 0, 1, 1], [], []>} : vector<128x128xbf16>, vector<128x324xbf16>, vector<128x324xf32> -> vector<128x324xf32>
    %22 = vector.broadcast %10 : vector<128x1xf32> to vector<128x324xf32>
    %23 = arith.addf %21, %22 : vector<128x324xf32>
    %c0_20 = arith.constant 0 : index
    %c0_21 = arith.constant 0 : index
    %c0_22 = arith.constant 0 : index
    %24 = vector.load %arg9[%c0_20, %c0_21, %c0_22] : memref<1x128x324xf32, #tpu.memory_space<vmem>>, vector<1x128x324xf32>
    %25 = vector.shape_cast %24 : vector<1x128x324xf32> to vector<128x324xf32>
    %26 = vector.shape_cast %23 : vector<128x324xf32> to vector<1x128x324xf32>
    tpu.vector_store %arg9[%c0_20, %c0_21, %c0_22], %26 {strides = array<i32>} : memref<1x128x324xf32, #tpu.memory_space<vmem>>, vector<1x128x324xf32>,
    return
  }
  func.func @transform_0(%arg0: i32) -> (i32, i32, i32) {
    %c0_i32 = arith.constant 0 : i32
    %c0_i32_0 = arith.constant 0 : i32
    %c0_i32_1 = arith.constant 0 : i32
    return %arg0, %c0_i32, %c0_i32_0 : i32, i32, i32
  }
  func.func @transform_1(%arg0: i32) -> (i32, i32) {
    %c0_i32 = arith.constant 0 : i32
    %c0_i32_0 = arith.constant 0 : i32
    %c0_i32_1 = arith.constant 0 : i32
    return %c0_i32, %c0_i32_0 : i32, i32
  }
  func.func @transform_2(%arg0: i32) -> (i32, i32) {
    %c0_i32 = arith.constant 0 : i32
    %c0_i32_0 = arith.constant 0 : i32
    %c0_i32_1 = arith.constant 0 : i32
    return %c0_i32, %c0_i32_0 : i32, i32
  }
  func.func @transform_3(%arg0: i32) -> (i32, i32) {
    %c0_i32 = arith.constant 0 : i32
    %c0_i32_0 = arith.constant 0 : i32
    %c0_i32_1 = arith.constant 0 : i32
    return %c0_i32, %c0_i32_0 : i32, i32
  }
  func.func @transform_4(%arg0: i32) -> (i32, i32) {
    %c0_i32 = arith.constant 0 : i32
    %c0_i32_0 = arith.constant 0 : i32
    %c0_i32_1 = arith.constant 0 : i32
    return %c0_i32, %c0_i32_0 : i32, i32
  }
  func.func @transform_5(%arg0: i32) -> (i32, i32) {
    %c0_i32 = arith.constant 0 : i32
    %c0_i32_0 = arith.constant 0 : i32
    %c0_i32_1 = arith.constant 0 : i32
    return %c0_i32, %c0_i32_0 : i32, i32
  }
  func.func @transform_6(%arg0: i32) -> (i32, i32) {
    %c0_i32 = arith.constant 0 : i32
    %c0_i32_0 = arith.constant 0 : i32
    %c0_i32_1 = arith.constant 0 : i32
    return %c0_i32, %c0_i32_0 : i32, i32
  }
  func.func @transform_7(%arg0: i32) -> (i32, i32) {
    %c0_i32 = arith.constant 0 : i32
    %c0_i32_0 = arith.constant 0 : i32
    %c0_i32_1 = arith.constant 0 : i32
    return %c0_i32, %c0_i32_0 : i32, i32
  }
  func.func @transform_8(%arg0: i32) -> (i32, i32, i32) {
    %c0_i32 = arith.constant 0 : i32
    %c0_i32_0 = arith.constant 0 : i32
    %c0_i32_1 = arith.constant 0 : i32
    return %arg0, %c0_i32, %c0_i32_0 : i32, i32, i32
  }
}

</mosaic_0001>

<bundles_post_ra>
// kernel: tpu_custom_call.1
= control target key start
LH: loop header
LB: loop body
LE: loop exit
PB: predicated region body
PF: predicated region fallthrough
CT: control target
= control target key end

     0   :  { %s3834_s27 = smov 0   ;;  %s5303_s0 = inlined_call_operand.vmem [shape: f32[2,128,256], index: 0, kind: input, shape index: {}]   ;;  %s5304_s1 = inlined_call_operand.vmem [shape: bf16[256,512], index: 1, kind: input, shape index: {}]   ;;  %s5305_s2 = inlined_call_operand.vmem [shape: bf16[128,128], index: 2, kind: input, shape index: {}]   ;;  %s5306_s3 = inlined_call_operand.vmem [shape: f32[128,1], index: 3, kind: input, shape index: {}]   ;;  %s5307_s4 = inlined_call_operand.vmem [shape: f32[128,512], index: 4, kind: input, shape index: {}]   ;;  %s5308_s5 = inlined_call_operand.vmem [shape: bf16[512,324], index: 5, kind: input, shape index: {}]   ;;  %s5309_s6 = inlined_call_operand.vmem [shape: bf16[128,128], index: 6, kind: input, shape index: {}]   ;;  %s5310_s7 = inlined_call_operand.vmem [shape: f32[128,1], index: 7, kind: input, shape index: {}]   ;;  %s5311_s8 = inlined_call_operand.vmem [shape: f32[2,128,324], index: 8, kind: output, shape index: {}]  }
   0x1 LB: > { %s3165_s28 = sadd.s32 4294967295, %s3786_s27   ;;  %p3169_p0 = scmp.ge.s32.totalorder %s3786_s27, 1  ;;  %s3786_s27 = sphi %s3834_s27, %s18_s27  }
   0x2   : > { %p262_p1 = scmp.lt.s32.totalorder %s3786_s27, 3 }
   0x4   : > { %p263_p2 = pnand %p3169_p0, %p262_p1 }
   0x6   : > { %266 = sbr.rel (%p263_p2) target bundleno = 1157 (0x485), region = 52 }
   0xb   : > { %v3540_v0 = vld [vmem:[%s5304_s1 + $0xe4] ss:$16 sps:$4 sm:$0xff]   ;;  %v3542_v1 = vld [vmem:[%s5304_s1 + $0xec] ss:$16 sps:$4 sm:$0xff]   ;;  %v3544_v2 = vld [vmem:[%s5304_s1 + $0xe0] ss:$16 sps:$4 sm:$0xff]  }
   0xc   : > { %739 = vmatprep.subr.bf16.mxu0 %v3540_v0  ;;  %v3545_v3 = vld [vmem:[%s5304_s1 + $0xe8] ss:$16 sps:$4 sm:$0xff]   ;;  %852 = vmatprep.subr.bf16.mxu1 %v3542_v1  ;;  %v3546_v4 = vld [vmem:[%s5304_s1 + $0xc4] ss:$16 sps:$4 sm:$0xff]   ;;  %v3548_v5 = vld [vmem:[%s5304_s1 + $0xcc] ss:$16 sps:$4 sm:$0xff]  }
   0xd   : > { %740 = vmatpush1.bf16.msra.mxu0 %v3544_v2  ;;  %853 = vmatpush1.bf16.msra.mxu1 %v3545_v3  ;;  %v3550_v6 = vld [vmem:[%s5304_s1 + $0xc0] ss:$16 sps:$4 sm:$0xff]   ;;  %v3551_v7 = vld [vmem:[%s5304_s1 + $0xc8] ss:$16 sps:$4 sm:$0xff]   ;;  %v3552_v8 = vld [vmem:[%s5304_s1 + $0xa4] ss:$16 sps:$4 sm:$0xff]  }
   0xe   : > { %741 = vmatprep.subr.bf16.mxu0 %v3546_v4  ;;  %854 = vmatprep.subr.bf16.mxu1 %v3548_v5  ;;  %v3554_v9 = vld [vmem:[%s5304_s1 + $0xac] ss:$16 sps:$4 sm:$0xff]   ;;  %v3556_v10 = vld [vmem:[%s5304_s1 + $0xa0] ss:$16 sps:$4 sm:$0xff]   ;;  %v3557_v11 = vld [vmem:[%s5304_s1 + $0xa8] ss:$16 sps:$4 sm:$0xff]  }
   0xf   : > { %v3558_v12 = vld [vmem:[%s5304_s1 + $0x84] ss:$16 sps:$4 sm:$0xff]   ;;  %v3560_v13 = vld [vmem:[%s5304_s1 + $0x8c] ss:$16 sps:$4 sm:$0xff]   ;;  %v3562_v14 = vld [vmem:[%s5304_s1 + $0x80] ss:$16 sps:$4 sm:$0xff]  }
  0x10   : > { %v3563_v15 = vld [vmem:[%s5304_s1 + $0x88] ss:$16 sps:$4 sm:$0xff]   ;;  %v3564_v16 = vld [vmem:[%s5304_s1 + $0x64] ss:$16 sps:$4 sm:$0xff]   ;;  %v3566_v17 = vld [vmem:[%s5304_s1 + $0x6c] ss:$16 sps:$4 sm:$0xff]  }
  0x11   : > { %742 = vmatpush1.bf16.msra.mxu0 %v3550_v6  ;;  %855 = vmatpush1.bf16.msra.mxu1 %v3551_v7  ;;  %v3568_v18 = vld [vmem:[%s5304_s1 + $0x60] ss:$16 sps:$4 sm:$0xff]   ;;  %v3569_v19 = vld [vmem:[%s5304_s1 + $0x68] ss:$16 sps:$4 sm:$0xff]   ;;  %v3570_v20 = vld [vmem:[%s5304_s1 + $0x44] ss:$16 sps:$4 sm:$0xff]  }
  0x12   : > { %743 = vmatprep.subr.bf16.mxu0 %v3552_v8  ;;  %856 = vmatprep.subr.bf16.mxu1 %v3554_v9  ;;  %v3572_v21 = vld [vmem:[%s5304_s1 + $0x4c] ss:$16 sps:$4 sm:$0xff]   ;;  %v3574_v22 = vld [vmem:[%s5304_s1 + $0x40] ss:$16 sps:$4 sm:$0xff]   ;;  %v3575_v23 = vld [vmem:[%s5304_s1 + $0x48] ss:$16 sps:$4 sm:$0xff]  }
  0x13   : > { %v3576_v24 = vld [vmem:[%s5304_s1 + $0x24] ss:$16 sps:$4 sm:$0xff]   ;;  %v3578_v25 = vld [vmem:[%s5304_s1 + $0x2c] ss:$16 sps:$4 sm:$0xff]   ;;  %v3580_v26 = vld [vmem:[%s5304_s1 + $0x20] ss:$16 sps:$4 sm:$0xff]  }
  0x14   : > { %v3581_v27 = vld [vmem:[%s5304_s1 + $0x28] ss:$16 sps:$4 sm:$0xff]   ;;  %v3582_v28 = vld [vmem:[%s5304_s1 + $0x4] ss:$16 sps:$4 sm:$0xff]   ;;  %v3584_v29 = vld [vmem:[%s5304_s1 + $0xc] ss:$16 sps:$4 sm:$0xff]  }
  0x15   : > { %744 = vmatpush1.bf16.msra.mxu0 %v3556_v10  ;;  %857 = vmatpush1.bf16.msra.mxu1 %v3557_v11  ;;  %v3586_v30 = vld [vmem:[%s5304_s1] ss:$16 sps:$4 sm:$0xff]   ;;  %v3587_v31 = vld [vmem:[%s5304_s1 + $0x8] ss:$16 sps:$4 sm:$0xff]   ;;  %v3588_v32 = vld [vmem:[%s5304_s1 + $0x1e4] ss:$16 sps:$4 sm:$0xff]  }
  0x16   : > { %745 = vmatprep.subr.bf16.mxu0 %v3558_v12  ;;  %858 = vmatprep.subr.bf16.mxu1 %v3560_v13  ;;  %p296_p3 = scmp.lt.s32.totalorder %s3165_s28, 1  ;;  %v3590_v33 = vld [vmem:[%s5304_s1 + $0x1ec] ss:$16 sps:$4 sm:$0xff]   ;;  %v3592_v34 = vld [vmem:[%s5304_s1 + $0x1e0] ss:$16 sps:$4 sm:$0xff]   ;;  %vm3063_vm0 = vcmask 556032  }
  0x17   : > { %v3593_v35 = vld [vmem:[%s5304_s1 + $0x1e8] ss:$16 sps:$4 sm:$0xff]   ;;  %v3594_v36 = vld [vmem:[%s5304_s1 + $0x1c4] ss:$16 sps:$4 sm:$0xff]   ;;  %v3596_v37 = vld [vmem:[%s5304_s1 + $0x1cc] ss:$16 sps:$4 sm:$0xff]  }
  0x18   : > { %s5389_s28 = smov (!%p296_p3, %s3165_s28), 1  ;;  %v3598_v38 = vld [vmem:[%s5304_s1 + $0x1c0] ss:$16 sps:$4 sm:$0xff]   ;;  %v3599_v39 = vld [vmem:[%s5304_s1 + $0x1c8] ss:$16 sps:$4 sm:$0xff]  }
  0x19   : > { %746 = vmatpush1.bf16.msra.mxu0 %v3562_v14  ;;  %859 = vmatpush1.bf16.msra.mxu1 %v3563_v15  ;;  %v3600_v40 = vld [vmem:[%s5304_s1 + $0x1a4] ss:$16 sps:$4 sm:$0xff]   ;;  %s3351_s9 = sshll.u32 %s5389_s28, 8  ;;  %v3602_v41 = vld [vmem:[%s5304_s1 + $0x1ac] ss:$16 sps:$4 sm:$0xff]   ;;  %s3528_s16 = smul.u32 384, %s5389_s28 }
  0x1a   : > { %747 = vmatprep.subr.bf16.mxu0 %v3564_v16  ;;  %860 = vmatprep.subr.bf16.mxu1 %v3566_v17  ;;  %v3604_v42 = vld [vmem:[%s5304_s1 + $0x1a0] ss:$16 sps:$4 sm:$0xff]   ;;  %v3605_v43 = vld [vmem:[%s5304_s1 + $0x1a8] ss:$16 sps:$4 sm:$0xff]   ;;  %s3984_s18 = scalar_lea.vmem %s5303_s0, %s3351_s9  ;;  %v3606_v44 = vld [vmem:[%s5304_s1 + $0x184] ss:$16 sps:$4 sm:$0xff]  }
  0x1b   : > { %v3608_v45 = vld [vmem:[%s5304_s1 + $0x18c] ss:$16 sps:$4 sm:$0xff]   ;;  %v3610_v48 = vld [vmem:[%s5304_s1 + $0x180] ss:$16 sps:$4 sm:$0xff]   ;;  %v3611_v49 = vld [vmem:[%s5304_s1 + $0x188] ss:$16 sps:$4 sm:$0xff]   ;;  %s5166_s20 = scalar_lea.vmem %s5311_s8, %s3528_s16 }
  0x1c   : > { %v308_v46 = vld [vmem:[%s3984_s18 + $0x8] sm:$0xff]  ;;  %v310_v47 = vld [vmem:[%s3984_s18 + $0x18] sm:$0xff]  ;;  %v3612_v51 = vld [vmem:[%s5304_s1 + $0x164] ss:$16 sps:$4 sm:$0xff]  }
  0x1d   : > { %748 = vmatpush1.bf16.msra.mxu0 %v3568_v18  ;;  %861 = vmatpush1.bf16.msra.mxu1 %v3569_v19  ;;  %v340_v50 = vpack.c.bf16 %v310_v47, %v308_v46  ;;  %v3614_v52 = vld [vmem:[%s5304_s1 + $0x16c] ss:$16 sps:$4 sm:$0xff]   ;;  %v3616_v53 = vld [vmem:[%s5304_s1 + $0x160] ss:$16 sps:$4 sm:$0xff]   ;;  %v3617_v54 = vld [vmem:[%s5304_s1 + $0x168] ss:$16 sps:$4 sm:$0xff]  }
  0x1e   : > { %749 = vmatprep.subr.bf16.mxu0 %v3570_v20  ;;  %862 = vmatprep.subr.bf16.mxu1 %v3572_v21  ;;  %v3618_v55 = vld [vmem:[%s5304_s1 + $0x144] ss:$16 sps:$4 sm:$0xff]   ;;  %v3620_v56 = vld [vmem:[%s5304_s1 + $0x14c] ss:$16 sps:$4 sm:$0xff]   ;;  %v3622_v57 = vld [vmem:[%s5304_s1 + $0x140] ss:$16 sps:$4 sm:$0xff]  }
  0x1f   : > { %771 = vmatprep.mubr.bf16.mxu0 %v340_v50  ;;  %884 = vmatprep.mubr.bf16.mxu1 %v340_v50  ;;  %v3623_v58 = vld [vmem:[%s5304_s1 + $0x148] ss:$16 sps:$4 sm:$0xff]   ;;  %v3624_v59 = vld [vmem:[%s5304_s1 + $0x124] ss:$16 sps:$4 sm:$0xff]   ;;  %v3626_v60 = vld [vmem:[%s5304_s1 + $0x12c] ss:$16 sps:$4 sm:$0xff]  }
  0x20   : > { %v3628_v61 = vld [vmem:[%s5304_s1 + $0x120] ss:$16 sps:$4 sm:$0xff]   ;;  %v3629_v62 = vld [vmem:[%s5304_s1 + $0x128] ss:$16 sps:$4 sm:$0xff]   ;;  %v3630_v63 = vld [vmem:[%s5304_s1 + $0x104] ss:$16 sps:$4 sm:$0xff]  }
  0x21   : > { %750 = vmatpush1.bf16.msra.mxu0 %v3574_v22  ;;  %863 = vmatpush1.bf16.msra.mxu1 %v3575_v23  ;;  %v3632_v0 = vld [vmem:[%s5304_s1 + $0x10c] ss:$16 sps:$4 sm:$0xff]   ;;  %v3634_v1 = vld [vmem:[%s5304_s1 + $0x100] ss:$16 sps:$4 sm:$0xff]   ;;  %v3635_v2 = vld [vmem:[%s5304_s1 + $0x108] ss:$16 sps:$4 sm:$0xff]  }
  0x22   : > { %751 = vmatprep.subr.bf16.mxu0 %v3576_v24  ;;  %864 = vmatprep.subr.bf16.mxu1 %v3578_v25  ;;  %v307_v3 = vld [vmem:[%s3984_s18] sm:$0xff]  ;;  %v309_v4 = vld [vmem:[%s3984_s18 + $0x10] sm:$0xff]  ;;  %v312_v5 = vld [vmem:[%s3984_s18 + $0x28] sm:$0xff] }
  0x23   : > { %v314_v6 = vld [vmem:[%s3984_s18 + $0x38] sm:$0xff]  ;;  %v339_v7 = vpack.c.bf16 %v309_v4, %v307_v3  ;;  %v311_v9 = vld [vmem:[%s3984_s18 + $0x20] sm:$0xff]  ;;  %v313_v10 = vld [vmem:[%s3984_s18 + $0x30] sm:$0xff] }
  0x24   : > { %v342_v8 = vpack.c.bf16 %v314_v6, %v312_v5  ;;  %v316_v11 = vld [vmem:[%s3984_s18 + $0x48] sm:$0xff]  ;;  %v318_v12 = vld [vmem:[%s3984_s18 + $0x58] sm:$0xff]  ;;  %v341_v13 = vpack.c.bf16 %v313_v10, %v311_v9  ;;  %v315_v15 = vld [vmem:[%s3984_s18 + $0x40] sm:$0xff] }
  0x25   : > { %752 = vmatpush1.bf16.msra.mxu0 %v3580_v26  ;;  %865 = vmatpush1.bf16.msra.mxu1 %v3581_v27  ;;  %v344_v14 = vpack.c.bf16 %v318_v12, %v316_v11  ;;  %v317_v16 = vld [vmem:[%s3984_s18 + $0x50] sm:$0xff]  ;;  %v320_v17 = vld [vmem:[%s3984_s18 + $0x68] sm:$0xff]  ;;  %v322_v18 = vld [vmem:[%s3984_s18 + $0x78] sm:$0xff] }
  0x26   : > { %753 = vmatprep.subr.bf16.mxu0 %v3582_v28  ;;  %866 = vmatprep.subr.bf16.mxu1 %v3584_v29  ;;  %v343_v19 = vpack.c.bf16 %v317_v16, %v315_v15  ;;  %v346_v20 = vpack.c.bf16 %v322_v18, %v320_v17  ;;  %v319_v21 = vld [vmem:[%s3984_s18 + $0x60] sm:$0xff]  ;;  %v321_v22 = vld [vmem:[%s3984_s18 + $0x70] sm:$0xff]  ;;  %v324_v23 = vld [vmem:[%s3984_s18 + $0x88] sm:$0xff] }
  0x27   : > { %v326_v24 = vld [vmem:[%s3984_s18 + $0x98] sm:$0xff]  ;;  %v345_v25 = vpack.c.bf16 %v321_v22, %v319_v21  ;;  %v323_v27 = vld [vmem:[%s3984_s18 + $0x80] sm:$0xff]  ;;  %v325_v28 = vld [vmem:[%s3984_s18 + $0x90] sm:$0xff] }
  0x28   : > { %v348_v26 = vpack.c.bf16 %v326_v24, %v324_v23  ;;  %v328_v29 = vld [vmem:[%s3984_s18 + $0xa8] sm:$0xff]  ;;  %v337_v46 = vld [vmem:[%s3984_s18 + $0xf0] sm:$0xff]  ;;  %v1205_v12 = vld [vmem:[%s5310_s7] sm:$0xff] }
  0x29   : > { %754 = vmatpush1.bf16.msra.mxu0 %v3586_v30  ;;  %867 = vmatpush1.bf16.msra.mxu1 %v3587_v31  ;;  %v330_v30 = vld [vmem:[%s3984_s18 + $0xb8] sm:$0xff]  ;;  %v347_v31 = vpack.c.bf16 %v325_v28, %v323_v27  ;;  %v982_v50 = vld [vmem:[%s5306_s3 + $0x8] sm:$0xff]  ;;  %v1207_v16 = vld [vmem:[%s5310_s7 + $0x10] sm:$0xff] }
  0x2a   : > { %755 = vmatprep.subr.bf16.mxu0 %v3588_v32  ;;  %868 = vmatprep.subr.bf16.mxu1 %v3590_v33  ;;  %v350_v32 = vpack.c.bf16 %v330_v30, %v328_v29  ;;  %v327_v33 = vld [vmem:[%s3984_s18 + $0xa0] sm:$0xff]  ;;  %v994_v11 = vld [vmem:[%s5306_s3 + $0x68] sm:$0xff]  ;;  %v996_v15 = vld [vmem:[%s5306_s3 + $0x78] sm:$0xff] }
  0x2b   : > { %v1208_v29 = vld [vmem:[%s5310_s7 + $0x18] sm:$0xff]  ;;  %v1211_v30 = vld [vmem:[%s5310_s7 + $0x30] sm:$0xff] }
  0x2d   : > { %756 = vmatpush2.bf16.msra.mxu0 %v3592_v34  ;;  %869 = vmatpush2.bf16.msra.mxu1 %v3593_v35  ;;  %v329_v34 = vld [vmem:[%s3984_s18 + $0xb0] sm:$0xff]  ;;  %v332_v35 = vld [vmem:[%s3984_s18 + $0xc8] sm:$0xff] }
  0x2e   : > { %757 = vmatprep.subr.bf16.mxu0 %v3594_v36  ;;  %870 = vmatprep.subr.bf16.mxu1 %v3596_v37  ;;  %v334_v36 = vld [vmem:[%s3984_s18 + $0xd8] sm:$0xff]  ;;  %v349_v37 = vpack.c.bf16 %v329_v34, %v327_v33 }
  0x31   : > { %758 = vmatpush2.bf16.msra.mxu0 %v3598_v38  ;;  %871 = vmatpush2.bf16.msra.mxu1 %v3599_v39  ;;  %v352_v38 = vpack.c.bf16 %v334_v36, %v332_v35  ;;  %v331_v39 = vld [vmem:[%s3984_s18 + $0xc0] sm:$0xff] }
  0x32   : > { %759 = vmatprep.subr.bf16.mxu0 %v3600_v40  ;;  %872 = vmatprep.subr.bf16.mxu1 %v3602_v41  ;;  %v333_v40 = vld [vmem:[%s3984_s18 + $0xd0] sm:$0xff]  ;;  %v336_v41 = vld [vmem:[%s3984_s18 + $0xe8] sm:$0xff] }
  0x35   : > { %760 = vmatpush2.bf16.msra.mxu0 %v3604_v42  ;;  %873 = vmatpush2.bf16.msra.mxu1 %v3605_v43  ;;  %v338_v42 = vld [vmem:[%s3984_s18 + $0xf8] sm:$0xff]  ;;  %v351_v43 = vpack.c.bf16 %v333_v40, %v331_v39 }
  0x36   : > { %761 = vmatprep.subr.bf16.mxu0 %v3606_v44  ;;  %874 = vmatprep.subr.bf16.mxu1 %v3608_v45  ;;  %v354_v44 = vpack.c.bf16 %v338_v42, %v336_v41  ;;  %v335_v45 = vld [vmem:[%s3984_s18 + $0xe0] sm:$0xff]  ;;  %v1212_v41 = vld [vmem:[%s5310_s7 + $0x38] sm:$0xff]  ;;  %v1215_v42 = vld [vmem:[%s5310_s7 + $0x50] sm:$0xff] }
  0x37   : > { %v353_v47 = vpack.c.bf16 %v337_v46, %v335_v45 }
  0x39   : > { %762 = vmatpush2.bf16.msra.mxu0 %v3610_v48  ;;  %875 = vmatpush2.bf16.msra.mxu1 %v3611_v49  ;;  %v5312_v48 = vmov 0   ;;  %v981_v49 = vld [vmem:[%s5306_s3] sm:$0xff] }
  0x3a   : > { %763 = vmatprep.subr.bf16.mxu0 %v3612_v51  ;;  %876 = vmatprep.subr.bf16.mxu1 %v3614_v52  ;;  %v983_v51 = vld [vmem:[%s5306_s3 + $0x10] sm:$0xff]  ;;  %v985_v52 = vld [vmem:[%s5306_s3 + $0x20] sm:$0xff] }
  0x3b   : > { %3538 = vset.pattern.permute.xlu0 %v5312_v48  ;;  %3539 = vset.pattern.permute.xlu1 %v5312_v48 }
  0x3c   : > { %1255 = vperm.xlu0 %3538, %v981_v49   ;;  %1265 = vperm.xlu1 %3539, %v983_v51   ;;  %v1217_v49 = vld [vmem:[%s5310_s7 + $0x60] sm:$0xff] }
  0x3d   : > { %764 = vmatpush2.bf16.msra.mxu0 %v3616_v53  ;;  %877 = vmatpush2.bf16.msra.mxu1 %v3617_v54  ;;  %v984_v53 = vld [vmem:[%s5306_s3 + $0x18] sm:$0xff]  ;;  %v987_v54 = vld [vmem:[%s5306_s3 + $0x30] sm:$0xff] }
  0x3e   : > { %765 = vmatprep.subr.bf16.mxu0 %v3618_v55  ;;  %878 = vmatprep.subr.bf16.mxu1 %v3620_v56  ;;  %v986_v55 = vld [vmem:[%s5306_s3 + $0x28] sm:$0xff]  ;;  %v989_v56 = vld [vmem:[%s5306_s3 + $0x40] sm:$0xff] }
  0x40   : > { %1260 = vperm.xlu0 %3538, %v982_v50   ;;  %1270 = vperm.xlu1 %3539, %v984_v53  }
  0x41   : > { %766 = vmatpush2.bf16.msra.mxu0 %v3622_v57  ;;  %879 = vmatpush2.bf16.msra.mxu1 %v3623_v58  ;;  %v988_v57 = vld [vmem:[%s5306_s3 + $0x38] sm:$0xff]  ;;  %v991_v58 = vld [vmem:[%s5306_s3 + $0x50] sm:$0xff] }
  0x42   : > { %767 = vmatprep.subr.bf16.mxu0 %v3624_v59  ;;  %880 = vmatprep.subr.bf16.mxu1 %v3626_v60 }
  0x44   : > { %1275 = vperm.xlu0 %3538, %v985_v52   ;;  %1280 = vperm.xlu1 %3539, %v986_v55   ;;  %v1219_v55 = vld [vmem:[%s5310_s7 + $0x70] sm:$0xff] }
  0x45   : > { %768 = vmatpush2.bf16.msra.mxu0 %v3628_v61  ;;  %881 = vmatpush2.bf16.msra.mxu1 %v3629_v62  ;;  %v990_v61 = vld [vmem:[%s5306_s3 + $0x48] sm:$0xff]  ;;  %v993_v62 = vld [vmem:[%s5306_s3 + $0x60] sm:$0xff] }
  0x46   : > { %769 = vmatprep.subr.bf16.mxu0 %v3630_v63  ;;  %882 = vmatprep.subr.bf16.mxu1 %v3632_v0 }
  0x48   : > { %1285 = vperm.xlu0 %3538, %v987_v54   ;;  %1290 = vperm.xlu1 %3539, %v988_v57   ;;  %v1216_v54 = vld [vmem:[%s5310_s7 + $0x58] sm:$0xff] }
  0x49   : > { %770 = vmatpush2.bf16.msra.mxu0 %v3634_v1  ;;  %883 = vmatpush2.bf16.msra.mxu1 %v3635_v2  ;;  %v992_v1 = vld [vmem:[%s5306_s3 + $0x58] sm:$0xff]  ;;  %v995_v2 = vld [vmem:[%s5306_s3 + $0x70] sm:$0xff] }
  0x4c   : > { %772 = vmatmul.mubr.bf16.vlgmr.msra.gmra.mxu0 %v339_v7  ;;  %885 = vmatmul.mubr.bf16.vlgmr.msra.gmra.mxu1 %v339_v7 }
  0x4d   : > { %781 = vmatprep.mubr.bf16.mxu0 %v342_v8  ;;  %894 = vmatprep.mubr.bf16.mxu1 %v342_v8 }
  0x4e   : > { %1295 = vperm.xlu0 %3538, %v989_v56   ;;  %1300 = vperm.xlu1 %3539, %v990_v61  }
  0x52   : > { %1305 = vperm.xlu0 %3538, %v991_v58   ;;  %1310 = vperm.xlu1 %3539, %v992_v1  }
  0x54   : > { %782 = vmatmul.mubr.bf16.gmra.mxu0 %v341_v13  ;;  %895 = vmatmul.mubr.bf16.gmra.mxu1 %v341_v13 }
  0x55   : > { %791 = vmatprep.mubr.bf16.mxu0 %v344_v14  ;;  %904 = vmatprep.mubr.bf16.mxu1 %v344_v14 }
  0x56   : > { %1315 = vperm.xlu0 %3538, %v993_v62   ;;  %1320 = vperm.xlu1 %3539, %v994_v11   ;;  %v1218_v62 = vld [vmem:[%s5310_s7 + $0x68] sm:$0xff] }
  0x5a   : > { %1325 = vperm.xlu0 %3538, %v995_v2   ;;  %1330 = vperm.xlu1 %3539, %v996_v15   ;;  %v1220_v15 = vld [vmem:[%s5310_s7 + $0x78] sm:$0xff] }
  0x5c   : > { %792 = vmatmul.mubr.bf16.gmra.mxu0 %v343_v19  ;;  %905 = vmatmul.mubr.bf16.gmra.mxu1 %v343_v19 }
  0x5d   : > { %801 = vmatprep.mubr.bf16.mxu0 %v346_v20  ;;  %914 = vmatprep.mubr.bf16.mxu1 %v346_v20 }
  0x5e   : > { %2725 = vperm.xlu0 %3538, %v1205_v12  }
  0x62   : > { %2735 = vperm.xlu0 %3538, %v1207_v16  }
  0x64   : > { %802 = vmatmul.mubr.bf16.gmra.mxu0 %v345_v25  ;;  %915 = vmatmul.mubr.bf16.gmra.mxu1 %v345_v25  ;;  %v1206_v25 = vld [vmem:[%s5310_s7 + $0x8] sm:$0xff] }
  0x65   : > { %811 = vmatprep.mubr.bf16.mxu0 %v348_v26  ;;  %924 = vmatprep.mubr.bf16.mxu1 %v348_v26  ;;  %v1209_v26 = vld [vmem:[%s5310_s7 + $0x20] sm:$0xff] }
  0x66   : > { %2730 = vperm.xlu1 %3539, %v1206_v25   ;;  %2745 = vperm.xlu0 %3538, %v1209_v26  }
  0x6a   : > { %2740 = vperm.xlu1 %3539, %v1208_v29   ;;  %2755 = vperm.xlu0 %3538, %v1211_v30  }
  0x6c   : > { %812 = vmatmul.mubr.bf16.gmra.mxu0 %v347_v31  ;;  %925 = vmatmul.mubr.bf16.gmra.mxu1 %v347_v31 }
  0x6d   : > { %821 = vmatprep.mubr.bf16.mxu0 %v350_v32  ;;  %934 = vmatprep.mubr.bf16.mxu1 %v350_v32 }
  0x74   : > { %822 = vmatmul.mubr.bf16.gmra.mxu0 %v349_v37  ;;  %935 = vmatmul.mubr.bf16.gmra.mxu1 %v349_v37  ;;  %v1210_v37 = vld [vmem:[%s5310_s7 + $0x28] sm:$0xff] }
  0x75   : > { %831 = vmatprep.mubr.bf16.mxu0 %v352_v38  ;;  %944 = vmatprep.mubr.bf16.mxu1 %v352_v38  ;;  %v1213_v38 = vld [vmem:[%s5310_s7 + $0x40] sm:$0xff] }
  0x76   : > { %2750 = vperm.xlu1 %3539, %v1210_v37   ;;  %2765 = vperm.xlu0 %3538, %v1213_v38  }
  0x7a   : > { %2760 = vperm.xlu1 %3539, %v1212_v41   ;;  %2775 = vperm.xlu0 %3538, %v1215_v42  }
  0x7c   : > { %832 = vmatmul.mubr.bf16.gmra.mxu0 %v351_v43  ;;  %945 = vmatmul.mubr.bf16.gmra.mxu1 %v351_v43 }
  0x7d   : > { %841 = vmatprep.mubr.bf16.mxu0 %v354_v44  ;;  %954 = vmatprep.mubr.bf16.mxu1 %v354_v44 }
  0x7e   : > { %2785 = vperm.xlu0 %3538, %v1217_v49  }
  0x82   : > { %2795 = vperm.xlu0 %3538, %v1219_v55  }
  0x84   : > { %842 = vmatmul.mubr.bf16.gmra.mxu0 %v353_v47  ;;  %955 = vmatmul.mubr.bf16.gmra.mxu1 %v353_v47  ;;  %v1214_v47 = vld [vmem:[%s5310_s7 + $0x48] sm:$0xff] }
  0x85   : > { %1413 = vmatprep.mubr.bf16.mxu0 %v5312_v48  ;;  %1526 = vmatprep.mubr.bf16.mxu1 %v5312_v48 }
  0x86   : > { %2770 = vperm.xlu1 %3539, %v1214_v47  }
  0x8a   : > { %2780 = vperm.xlu1 %3539, %v1216_v54  }
  0x8e   : > { %2790 = vperm.xlu1 %3539, %v1218_v62  }
  0x92   : > { %2800 = vperm.xlu1 %3539, %v1220_v15  }
 0x10c   : > { %v4112_v59 = vpop.f32.mrf.mxu0  ;;  %v4114_v60 = vpop.f32.mrf.mxu1 }
 0x10d   : > { %5334 = vst [vmem:[#allocation2_spill] sm:$0xff] %v4112_v59  ;;  %5335 = vst [vmem:[#allocation3_spill] sm:$0xff] %v4114_v60 }
 0x10e   : > { %v4122_v63 = vpop.f32.mrf.mxu0  ;;  %v4124_v0 = vpop.f32.mrf.mxu1 }
 0x10f   : > { %5336 = vst [vmem:[#allocation4_spill] sm:$0xff] %v4124_v0 }
 0x110   : > { %v4132_v3 = vpop.f32.mrf.mxu0  ;;  %v4134_v4 = vpop.f32.mrf.mxu1 }
 0x111   : > { %5337 = vst [vmem:[#allocation5_spill] sm:$0xff] %v4132_v3  ;;  %5338 = vst [vmem:[#allocation6_spill] sm:$0xff] %v4134_v4 }
 0x112   : > { %v4140_v7 = vpop.f32.mrf.mxu0  ;;  %v4142_v8 = vpop.f32.mrf.mxu1 }
 0x113   : > { %5339 = vst [vmem:[#allocation7_spill] sm:$0xff] %v4142_v8 }
 0x114   : > { %v4144_v9 = vpop.f32.mrf.mxu0  ;;  %v4146_v10 = vpop.f32.mrf.mxu1 }
 0x115   : > { %5340 = vst [vmem:[#allocation8_spill] sm:$0xff] %v4144_v9  ;;  %5341 = vst [vmem:[#allocation9_spill] sm:$0xff] %v4146_v10 }
 0x116   : > { %v4154_v13 = vpop.f32.mrf.mxu0  ;;  %v4156_v14 = vpop.f32.mrf.mxu1 }
 0x118   : > { %v4164_v17 = vpop.f32.mrf.mxu0  ;;  %v4166_v18 = vpop.f32.mrf.mxu1 }
 0x119   : > { %5342 = vst [vmem:[#allocation10_spill] sm:$0xff] %v4164_v17  ;;  %5343 = vst [vmem:[#allocation11_spill] sm:$0xff] %v4166_v18 }
 0x11a   : > { %v4172_v21 = vpop.f32.mrf.mxu0  ;;  %v4174_v22 = vpop.f32.mrf.mxu1 }
 0x11c   : > { %v4176_v23 = vpop.f32.mrf.mxu0  ;;  %v4178_v24 = vpop.f32.mrf.mxu1 }
 0x11e   : > { %v4186_v27 = vpop.f32.mrf.mxu0  ;;  %v4188_v28 = vpop.f32.mrf.mxu1 }
 0x120   : > { %v4196_v31 = vpop.f32.mrf.mxu0  ;;  %v4198_v32 = vpop.f32.mrf.mxu1 }
 0x122   : > { %v4200_v33 = vpop.f32.mrf.mxu0  ;;  %v4202_v34 = vpop.f32.mrf.mxu1 }
 0x124   : > { %v4204_v35 = vpop.f32.mrf.mxu0  ;;  %v4206_v36 = vpop.f32.mrf.mxu1 }
 0x126   : > { %v4214_v39 = vpop.f32.mrf.mxu0  ;;  %v4216_v40 = vpop.f32.mrf.mxu1 }
 0x128   : > { %v4224_v43 = vpop.f32.mrf.mxu0  ;;  %v4226_v44 = vpop.f32.mrf.mxu1 }
 0x12a   : > { %v4228_v45 = vpop.f32.mrf.mxu0  ;;  %v4230_v46 = vpop.f32.mrf.mxu1 }
 0x12c   : > { %v4238_v50 = vpop.f32.mrf.mxu0  ;;  %v4240_v51 = vpop.f32.mrf.mxu1 }
 0x12e   : > { %v4242_v52 = vpop.f32.mrf.mxu0  ;;  %v4244_v53 = vpop.f32.mrf.mxu1 }
 0x130   : > { %v4252_v56 = vpop.f32.mrf.mxu0  ;;  %v4254_v57 = vpop.f32.mrf.mxu1 }
 0x132   : > { %v819_v58 = vpop.f32.mrf.mxu0  ;;  %v932_v61 = vpop.f32.mrf.mxu1 }
 0x134   : > { %v823_v1 = vpop.f32.mrf.mxu0  ;;  %v936_v2 = vpop.f32.mrf.mxu1 }
 0x136   : > { %v825_v11 = vpop.f32.mrf.mxu0  ;;  %v938_v12 = vpop.f32.mrf.mxu1 }
 0x138   : > { %v827_v16 = vpop.f32.mrf.mxu0  ;;  %v940_v25 = vpop.f32.mrf.mxu1 }
 0x13a   : > { %v829_v26 = vpop.f32.mrf.mxu0  ;;  %v942_v29 = vpop.f32.mrf.mxu1 }
 0x13b   : > { %v1242_v8 = vpack.c.bf16 %v829_v26, %v825_v11  ;;  %v1244_v0 = vpack.c.bf16 %v942_v29, %v938_v12  ;;  %v3664_v11 = vld [vmem:[%s5308_s5 + $0x64] ss:$12 sps:$4 sm:$0xff]   ;;  %v3670_v26 = vld [vmem:[%s5308_s5 + $0x4c] ss:$12 sps:$4 sm:$0xff]  }
 0x13c   : > { %v833_v30 = vpop.f32.mrf.mxu0  ;;  %v946_v37 = vpop.f32.mrf.mxu1  ;;  %v3667_v12 = vld [vmem:[%s5308_s5 + $0x1e4] ss:$12 sps:$4 sm:$0xff]   ;;  %v3673_v29 = vld [vmem:[%s5308_s5 + $0x1cc] ss:$12 sps:$4 sm:$0xff]  }
 0x13e   : > { %v835_v38 = vpop.f32.mrf.mxu0  ;;  %v948_v41 = vpop.f32.mrf.mxu1 }
 0x140   : > { %v837_v42 = vpop.f32.mrf.mxu0  ;;  %v950_v47 = vpop.f32.mrf.mxu1 }
 0x141   : > { %v1245_v9 = vpack.c.bf16 %v837_v42, %v833_v30  ;;  %v1247_v17 = vpack.c.bf16 %v950_v47, %v946_v37  ;;  %v3638_v30 = vld [vmem:[%s5305_s2 + $0x10] sm:$0xff]  }
 0x142   : > { %v839_v49 = vpop.f32.mrf.mxu0  ;;  %v952_v54 = vpop.f32.mrf.mxu1  ;;  %v3668_v37 = vld [vmem:[%s5308_s5 + $0x48] ss:$12 sps:$4 sm:$0xff]   ;;  %v3674_v47 = vld [vmem:[%s5308_s5 + $0x30] ss:$12 sps:$4 sm:$0xff]  }
 0x143   : > { %v1246_v10 = vpack.c.bf16 %v839_v49, %v835_v38  ;;  %v1248_v18 = vpack.c.bf16 %v952_v54, %v948_v41  ;;  %v3671_v38 = vld [vmem:[%s5308_s5 + $0x1c8] ss:$12 sps:$4 sm:$0xff]   ;;  %v3677_v49 = vld [vmem:[%s5308_s5 + $0x1b0] ss:$12 sps:$4 sm:$0xff]  }
 0x144   : > { %v843_v55 = vpop.f32.mrf.mxu0  ;;  %v956_v48 = vpop.f32.mrf.mxu1  ;;  %v3676_v41 = vld [vmem:[%s5308_s5 + $0x34] ss:$12 sps:$4 sm:$0xff]   ;;  %v3682_v54 = vld [vmem:[%s5308_s5 + $0x1c] ss:$12 sps:$4 sm:$0xff]  }
 0x145   : > { %v3679_v42 = vld [vmem:[%s5308_s5 + $0x1b4] ss:$12 sps:$4 sm:$0xff]  }
 0x146   : > { %v845_v62 = vpop.f32.mrf.mxu0  ;;  %v958_v6 = vpop.f32.mrf.mxu1 }
 0x148   : > { %v847_v5 = vpop.f32.mrf.mxu0  ;;  %v960_v20 = vpop.f32.mrf.mxu1 }
 0x149   : > { %v1249_v3 = vpack.c.bf16 %v847_v5, %v843_v55  ;;  %v1251_v15 = vpack.c.bf16 %v960_v20, %v956_v48  ;;  %v1238_v48 = vpack.c.bf16 %v819_v58, %v4242_v52  ;;  %v1240_v5 = vpack.c.bf16 %v932_v61, %v4244_v53  ;;  %v3650_v53 = vld [vmem:[%s5308_s5 + $0x90] ss:$12 sps:$4 sm:$0xff]   ;;  %v3637_v61 = vld [vmem:[%s5305_s2 + $0x8] sm:$0xff]  }
 0x14a   : > { %v849_v19 = vpop.f32.mrf.mxu0  ;;  %v962_v60 = vpop.f32.mrf.mxu1  ;;  %v1226_v20 = vpack.c.bf16 %v4172_v21, %v4154_v13  ;;  %v5352_v21 = vld [vmem:[#allocation5_spill] sm:$0xff]  ;;  %v5358_v52 = vmov 0  }
 0x14b   : > { %v1250_v4 = vpack.c.bf16 %v849_v19, %v845_v62  ;;  %v1252_v59 = vpack.c.bf16 %v962_v60, %v958_v6  ;;  %v1241_v19 = vpack.c.bf16 %v827_v16, %v823_v1  ;;  %v1243_v60 = vpack.c.bf16 %v940_v25, %v936_v2  ;;  %v3661_v58 = vld [vmem:[%s5308_s5 + $0x1fc] ss:$12 sps:$4 sm:$0xff]   ;;  %v3656_v1 = vld [vmem:[%s5308_s5 + $0x78] ss:$12 sps:$4 sm:$0xff]   ;;  %v3662_v16 = vld [vmem:[%s5308_s5 + $0x60] ss:$12 sps:$4 sm:$0xff]  }
 0x14c   : > { %v1233_v6 = vpack.c.bf16 %v4224_v43, %v4204_v35  ;;  %v1228_v35 = vpack.c.bf16 %v4174_v22, %v4156_v14  ;;  %v3646_v14 = vld [vmem:[%s5308_s5 + $0xac] ss:$12 sps:$4 sm:$0xff]   ;;  %v5353_v22 = vld [vmem:[#allocation2_spill] sm:$0xff]  ;;  %v3685_v55 = vld [vmem:[%s5308_s5 + $0x19c] ss:$12 sps:$4 sm:$0xff]  }
 0x14d   : > { %1381 = vmatprep.subr.bf16.mxu0 %v1250_v4  ;;  %1494 = vmatprep.subr.bf16.mxu1 %v1252_v59  ;;  %v1237_v59 = vpack.c.bf16 %v4252_v56, %v4238_v50  ;;  %v1234_v4 = vpack.c.bf16 %v4228_v45, %v4214_v39  ;;  %v5354_v39 = vpack.c.bf16 %v5352_v21, %v5353_v22  ;;  %v5356_v43 = vld [vmem:[#allocation3_spill] sm:$0xff]  ;;  %v3652_v50 = vld [vmem:[%s5308_s5 + $0x94] ss:$12 sps:$4 sm:$0xff]   ;;  %v3653_v56 = vld [vmem:[%s5308_s5 + $0x210] ss:$12 sps:$4 sm:$0xff]  }
 0x14e   : > { %1382 = vmatpush1.bf16.msra.mxu0 %v1249_v3  ;;  %1495 = vmatpush1.bf16.msra.mxu1 %v1251_v15  ;;  %v1239_v3 = vpack.c.bf16 %v4254_v57, %v4240_v51  ;;  %v3644_v45 = vld [vmem:[%s5308_s5 + $0xa8] ss:$12 sps:$4 sm:$0xff]   ;;  %v3659_v2 = vld [vmem:[%s5308_s5 + $0x1f8] ss:$12 sps:$4 sm:$0xff]   ;;  %v3665_v25 = vld [vmem:[%s5308_s5 + $0x1e0] ss:$12 sps:$4 sm:$0xff]  }
 0x14f   : > { %1383 = vmatprep.subr.bf16.mxu0 %v1246_v10  ;;  %1496 = vmatprep.subr.bf16.mxu1 %v1248_v18  ;;  %v1232_v10 = vpack.c.bf16 %v4202_v34, %v4188_v28  ;;  %v1231_v18 = vpack.c.bf16 %v4198_v32, %v4178_v24  ;;  %v5344_v28 = vld [vmem:[#allocation4_spill] sm:$0xff]  ;;  %v5349_v24 = vld [vmem:[#allocation11_spill] sm:$0xff]  ;;  %v5350_v32 = vld [vmem:[#allocation9_spill] sm:$0xff] }
 0x150   : > { %v5351_v13 = vpack.c.bf16 %v5349_v24, %v5350_v32  ;;  %v3655_v51 = vld [vmem:[%s5308_s5 + $0x214] ss:$12 sps:$4 sm:$0xff]   ;;  %v3658_v57 = vld [vmem:[%s5308_s5 + $0x7c] ss:$12 sps:$4 sm:$0xff]   ;;  %v3680_v15 = vld [vmem:[%s5308_s5 + $0x18] ss:$12 sps:$4 sm:$0xff]  }
 0x151   : > { %v3639_v62 = vld [vmem:[%s5305_s2 + $0x18] sm:$0xff]   ;;  %v3642_v24 = vld [vmem:[%s5305_s2 + $0x30] sm:$0xff]  }
 0x152   : > { %1384 = vmatpush1.bf16.msra.mxu0 %v1245_v9  ;;  %1497 = vmatpush1.bf16.msra.mxu1 %v1247_v17  ;;  %v1230_v9 = vpack.c.bf16 %v4200_v33, %v4186_v27  ;;  %v1229_v17 = vpack.c.bf16 %v4196_v31, %v4176_v23  ;;  %v1222_v27 = vpack.c.bf16 %v4140_v7, %v4122_v63  ;;  %v5345_v33 = vld [vmem:[#allocation7_spill] sm:$0xff]  ;;  %v5346_v23 = vld [vmem:[#allocation10_spill] sm:$0xff]  ;;  %v5347_v31 = vld [vmem:[#allocation8_spill] sm:$0xff] }
 0x153   : > { %1385 = vmatprep.subr.bf16.mxu0 %v1242_v8  ;;  %1498 = vmatprep.subr.bf16.mxu1 %v1244_v0  ;;  %v1236_v0 = vpack.c.bf16 %v4230_v46, %v4216_v40  ;;  %v1235_v8 = vpack.c.bf16 %v4226_v44, %v4206_v36  ;;  %v1224_v34 = vpack.c.bf16 %v5345_v33, %v5344_v28  ;;  %v3649_v63 = vld [vmem:[%s5308_s5 + $0x22c] ss:$12 sps:$4 sm:$0xff]   ;;  %v3636_v7 = vld [vmem:[%s5305_s2] sm:$0xff]   ;;  %v3647_v46 = vld [vmem:[%s5308_s5 + $0x228] ss:$12 sps:$4 sm:$0xff]  }
 0x154   : > { %v5348_v36 = vpack.c.bf16 %v5346_v23, %v5347_v31  ;;  %v5355_v40 = vld [vmem:[#allocation6_spill] sm:$0xff]  ;;  %v3643_v32 = vld [vmem:[%s5305_s2 + $0x38] sm:$0xff]  }
 0x155   : > { %v5357_v44 = vpack.c.bf16 %v5355_v40, %v5356_v43  ;;  %v3704_v28 = vld [vmem:[%s5308_s5 + $0x138] ss:$12 sps:$4 sm:$0xff]   ;;  %v3710_v31 = vld [vmem:[%s5308_s5 + $0x120] ss:$12 sps:$4 sm:$0xff]   ;;  %v3725_v40 = vld [vmem:[%s5308_s5 + $0x270] ss:$12 sps:$4 sm:$0xff]  }
 0x156   : > { %1386 = vmatpush1.bf16.msra.mxu0 %v1241_v19  ;;  %1499 = vmatpush1.bf16.msra.mxu1 %v1243_v60  ;;  %v3683_v19 = vld [vmem:[%s5308_s5 + $0x198] ss:$12 sps:$4 sm:$0xff]   ;;  %v3724_v21 = vld [vmem:[%s5308_s5 + $0xf4] ss:$12 sps:$4 sm:$0xff]   ;;  %v3730_v43 = vld [vmem:[%s5308_s5 + $0xdc] ss:$12 sps:$4 sm:$0xff]  }
 0x157   : > { %1387 = vmatprep.subr.bf16.mxu0 %v1238_v48  ;;  %1500 = vmatprep.subr.bf16.mxu1 %v1240_v5  ;;  %v3688_v60 = vld [vmem:[%s5308_s5 + $0x4] ss:$12 sps:$4 sm:$0xff]   ;;  %v3686_v5 = vld [vmem:[%s5308_s5] ss:$12 sps:$4 sm:$0xff]  }
 0x158   : > { %v3691_v48 = vld [vmem:[%s5308_s5 + $0x184] ss:$12 sps:$4 sm:$0xff]   ;;  %v3727_v22 = vld [vmem:[%s5308_s5 + $0x274] ss:$12 sps:$4 sm:$0xff]  }
 0x159   : > { %v3707_v33 = vld [vmem:[%s5308_s5 + $0x2b8] ss:$12 sps:$4 sm:$0xff]  }
 0x15a   : > { %1388 = vmatpush1.bf16.msra.mxu0 %v1237_v59  ;;  %1501 = vmatpush1.bf16.msra.mxu1 %v1239_v3  ;;  %v3689_v59 = vld [vmem:[%s5308_s5 + $0x180] ss:$12 sps:$4 sm:$0xff]   ;;  %v3715_v23 = vld [vmem:[%s5308_s5 + $0x2a4] ss:$12 sps:$4 sm:$0xff]  }
 0x15b   : > { %1389 = vmatprep.subr.bf16.mxu0 %v1234_v4  ;;  %1502 = vmatprep.subr.bf16.mxu1 %v1236_v0  ;;  %v3694_v3 = vld [vmem:[%s5308_s5 + $0x16c] ss:$12 sps:$4 sm:$0xff]   ;;  %v3640_v0 = vld [vmem:[%s5305_s2 + $0x20] sm:$0xff]  }
 0x15c   : > { %v3697_v4 = vld [vmem:[%s5308_s5 + $0x2ec] ss:$12 sps:$4 sm:$0xff]  }
 0x15e   : > { %1390 = vmatpush1.bf16.msra.mxu0 %v1233_v6  ;;  %1503 = vmatpush1.bf16.msra.mxu1 %v1235_v8  ;;  %v3692_v6 = vld [vmem:[%s5308_s5 + $0x168] ss:$12 sps:$4 sm:$0xff]  }
 0x15f   : > { %1391 = vmatprep.subr.bf16.mxu0 %v1230_v9  ;;  %1504 = vmatprep.subr.bf16.mxu1 %v1232_v10  ;;  %v3695_v8 = vld [vmem:[%s5308_s5 + $0x2e8] ss:$12 sps:$4 sm:$0xff]  }
 0x160   : > { %v3700_v9 = vld [vmem:[%s5308_s5 + $0x154] ss:$12 sps:$4 sm:$0xff]  }
 0x161   : > { %v3703_v10 = vld [vmem:[%s5308_s5 + $0x2d4] ss:$12 sps:$4 sm:$0xff]  }
 0x162   : > { %1392 = vmatpush1.bf16.msra.mxu0 %v1229_v17  ;;  %1505 = vmatpush1.bf16.msra.mxu1 %v1231_v18  ;;  %v3698_v17 = vld [vmem:[%s5308_s5 + $0x150] ss:$12 sps:$4 sm:$0xff]  }
 0x163   : > { %1393 = vmatprep.subr.bf16.mxu0 %v1226_v20  ;;  %1506 = vmatprep.subr.bf16.mxu1 %v1228_v35  ;;  %v3701_v18 = vld [vmem:[%s5308_s5 + $0x2d0] ss:$12 sps:$4 sm:$0xff]  }
 0x164   : > { %v3706_v20 = vld [vmem:[%s5308_s5 + $0x13c] ss:$12 sps:$4 sm:$0xff]  }
 0x165   : > { %v3709_v35 = vld [vmem:[%s5308_s5 + $0x2bc] ss:$12 sps:$4 sm:$0xff]  }
 0x166   : > { %1394 = vmatpush1.bf16.msra.mxu0 %v5348_v36  ;;  %1507 = vmatpush1.bf16.msra.mxu1 %v5351_v13  ;;  %v3713_v36 = vld [vmem:[%s5308_s5 + $0x2a0] ss:$12 sps:$4 sm:$0xff]  }
 0x167   : > { %1395 = vmatprep.subr.bf16.mxu0 %v1222_v27  ;;  %1508 = vmatprep.subr.bf16.mxu1 %v1224_v34  ;;  %v3641_v27 = vld [vmem:[%s5305_s2 + $0x28] sm:$0xff]   ;;  %v3712_v34 = vld [vmem:[%s5308_s5 + $0x124] ss:$12 sps:$4 sm:$0xff]  }
 0x168   : > { %v3718_v13 = vld [vmem:[%s5308_s5 + $0x10c] ss:$12 sps:$4 sm:$0xff]  }
 0x16a   : > { %1396 = vmatpush1.bf16.msra.mxu0 %v5354_v39  ;;  %1509 = vmatpush1.bf16.msra.mxu1 %v5357_v44  ;;  %v3722_v39 = vld [vmem:[%s5308_s5 + $0xf0] ss:$12 sps:$4 sm:$0xff]  }
 0x16b   : > { %2279 = vmatprep.subr.bf16.mxu0 %v3646_v14  ;;  %2392 = vmatprep.subr.bf16.mxu1 %v3649_v63  ;;  %v3721_v14 = vld [vmem:[%s5308_s5 + $0x28c] ss:$12 sps:$4 sm:$0xff]   ;;  %v3716_v63 = vld [vmem:[%s5308_s5 + $0x108] ss:$12 sps:$4 sm:$0xff]  }
 0x16c   : > { %v3733_v44 = vld [vmem:[%s5308_s5 + $0x25c] ss:$12 sps:$4 sm:$0xff]  }
 0x16d   : > { %1414 = vmatmul.mubr.bf16.vlgmr.msra.gmra.mxu0 %v3636_v7  ;;  %1527 = vmatmul.mubr.bf16.vlgmr.msra.gmra.mxu1 %v3636_v7  ;;  %v3719_v7 = vld [vmem:[%s5308_s5 + $0x288] ss:$12 sps:$4 sm:$0xff]  }
 0x16e   : > { %1423 = vmatprep.mubr.bf16.mxu0 %v5358_v52  ;;  %1536 = vmatprep.mubr.bf16.mxu1 %v5358_v52 }
 0x16f   : > { %2280 = vmatpush1.bf16.msra.mxu0 %v3644_v45  ;;  %2393 = vmatpush1.bf16.msra.mxu1 %v3647_v46  ;;  %v3728_v45 = vld [vmem:[%s5308_s5 + $0xd8] ss:$12 sps:$4 sm:$0xff]  }
 0x170   : > { %2281 = vmatprep.subr.bf16.mxu0 %v3652_v50  ;;  %2394 = vmatprep.subr.bf16.mxu1 %v3655_v51  ;;  %v3731_v46 = vld [vmem:[%s5308_s5 + $0x258] ss:$12 sps:$4 sm:$0xff]   ;;  %v3734_v51 = vld [vmem:[%s5308_s5 + $0xc0] ss:$12 sps:$4 sm:$0xff]  }
 0x171   : > { %v3736_v50 = vld [vmem:[%s5308_s5 + $0xc4] ss:$12 sps:$4 sm:$0xff]  }
 0x173   : > { %2282 = vmatpush1.bf16.msra.mxu0 %v3650_v53  ;;  %2395 = vmatpush1.bf16.msra.mxu1 %v3653_v56  ;;  %v3737_v53 = vld [vmem:[%s5308_s5 + $0x240] ss:$12 sps:$4 sm:$0xff]   ;;  %v3739_v56 = vld [vmem:[%s5308_s5 + $0x244] ss:$12 sps:$4 sm:$0xff]  }
 0x174   : > { %2283 = vmatprep.subr.bf16.mxu0 %v3658_v57  ;;  %2396 = vmatprep.subr.bf16.mxu1 %v3661_v58  ;;  %v3740_v57 = vld [vmem:[%s5308_s5 + $0x170] ss:$12 sps:$4 sm:$0xff]  }
 0x175   : > { %1424 = vmatmul.mubr.bf16.gmra.mxu0 %v3637_v61  ;;  %1537 = vmatmul.mubr.bf16.gmra.mxu1 %v3637_v61  ;;  %v3741_v58 = vld [vmem:[%s5308_s5 + $0x2f0] ss:$12 sps:$4 sm:$0xff]   ;;  %v1256_v61 = vpop.permute.xlu0 %1255 }
 0x176   : > { %1433 = vmatprep.mubr.bf16.mxu0 %v5358_v52  ;;  %1546 = vmatprep.mubr.bf16.mxu1 %v5358_v52 }
 0x177   : > { %2284 = vmatpush1.bf16.msra.mxu0 %v3656_v1  ;;  %2397 = vmatpush1.bf16.msra.mxu1 %v3659_v2 }
 0x178   : > { %2285 = vmatprep.subr.bf16.mxu0 %v3664_v11  ;;  %2398 = vmatprep.subr.bf16.mxu1 %v3667_v12 }
 0x17b   : > { %2286 = vmatpush1.bf16.msra.mxu0 %v3662_v16  ;;  %2399 = vmatpush1.bf16.msra.mxu1 %v3665_v25 }
 0x17c   : > { %2287 = vmatprep.subr.bf16.mxu0 %v3670_v26  ;;  %2400 = vmatprep.subr.bf16.mxu1 %v3673_v29 }
 0x17d   : > { %1434 = vmatmul.mubr.bf16.gmra.mxu0 %v3638_v30  ;;  %1547 = vmatmul.mubr.bf16.gmra.mxu1 %v3638_v30 }
 0x17e   : > { %1443 = vmatprep.mubr.bf16.mxu0 %v5358_v52  ;;  %1556 = vmatprep.mubr.bf16.mxu1 %v5358_v52 }
 0x17f   : > { %2288 = vmatpush1.bf16.msra.mxu0 %v3668_v37  ;;  %2401 = vmatpush1.bf16.msra.mxu1 %v3671_v38  ;;  %v1261_v37 = vpop.permute.xlu0 %1260  ;;  %v1266_v38 = vpop.permute.xlu1 %1265 }
 0x180   : > { %2289 = vmatprep.subr.bf16.mxu0 %v3676_v41  ;;  %2402 = vmatprep.subr.bf16.mxu1 %v3679_v42 }
 0x183   : > { %2290 = vmatpush1.bf16.msra.mxu0 %v3674_v47  ;;  %2403 = vmatpush1.bf16.msra.mxu1 %v3677_v49 }
 0x184   : > { %2291 = vmatprep.subr.bf16.mxu0 %v3682_v54  ;;  %2404 = vmatprep.subr.bf16.mxu1 %v3685_v55 }
 0x185   : > { %1444 = vmatmul.mubr.bf16.gmra.mxu0 %v3639_v62  ;;  %1557 = vmatmul.mubr.bf16.gmra.mxu1 %v3639_v62  ;;  %v997_v62 = vld [vmem:[%s5307_s4] sm:$0xff] }
 0x186   : > { %1453 = vmatprep.mubr.bf16.mxu0 %v5358_v52  ;;  %1566 = vmatprep.mubr.bf16.mxu1 %v5358_v52 }
 0x187   : > { %2292 = vmatpush1.bf16.msra.mxu0 %v3680_v15  ;;  %2405 = vmatpush1.bf16.msra.mxu1 %v3683_v19  ;;  %v998_v15 = vld [vmem:[%s5307_s4 + $0x8] sm:$0xff] }
 0x188   : > { %2293 = vmatprep.subr.bf16.mxu0 %v3688_v60  ;;  %2406 = vmatprep.subr.bf16.mxu1 %v3691_v48  ;;  %v1001_v60 = vld [vmem:[%s5307_s4 + $0x20] sm:$0xff] }
 0x18b   : > { %2294 = vmatpush1.bf16.msra.mxu0 %v3686_v5  ;;  %2407 = vmatpush1.bf16.msra.mxu1 %v3689_v59 }
 0x18c   : > { %2295 = vmatprep.subr.bf16.mxu0 %v3694_v3  ;;  %2408 = vmatprep.subr.bf16.mxu1 %v3697_v4  ;;  %v1003_v4 = vld [vmem:[%s5307_s4 + $0x30] sm:$0xff] }
 0x18d   : > { %1454 = vmatmul.mubr.bf16.gmra.mxu0 %v3640_v0  ;;  %1567 = vmatmul.mubr.bf16.gmra.mxu1 %v3640_v0 }
 0x18e   : > { %1463 = vmatprep.mubr.bf16.mxu0 %v5358_v52  ;;  %1576 = vmatprep.mubr.bf16.mxu1 %v5358_v52 }
 0x18f   : > { %2296 = vmatpush2.bf16.msra.mxu0 %v3692_v6  ;;  %2409 = vmatpush2.bf16.msra.mxu1 %v3695_v8  ;;  %v1002_v6 = vld [vmem:[%s5307_s4 + $0x28] sm:$0xff]  ;;  %v1004_v8 = vld [vmem:[%s5307_s4 + $0x38] sm:$0xff] }
 0x190   : > { %2297 = vmatprep.subr.bf16.mxu0 %v3700_v9  ;;  %2410 = vmatprep.subr.bf16.mxu1 %v3703_v10 }
 0x193   : > { %2298 = vmatpush2.bf16.msra.mxu0 %v3698_v17  ;;  %2411 = vmatpush2.bf16.msra.mxu1 %v3701_v18  ;;  %v1000_v18 = vld [vmem:[%s5307_s4 + $0x18] sm:$0xff] }
 0x194   : > { %2299 = vmatprep.subr.bf16.mxu0 %v3706_v20  ;;  %2412 = vmatprep.subr.bf16.mxu1 %v3709_v35 }
 0x195   : > { %1464 = vmatmul.mubr.bf16.gmra.mxu0 %v3641_v27  ;;  %1577 = vmatmul.mubr.bf16.gmra.mxu1 %v3641_v27 }
 0x196   : > { %1473 = vmatprep.mubr.bf16.mxu0 %v5358_v52  ;;  %1586 = vmatprep.mubr.bf16.mxu1 %v5358_v52 }
 0x197   : > { %2300 = vmatpush2.bf16.msra.mxu0 %v3704_v28  ;;  %2413 = vmatpush2.bf16.msra.mxu1 %v3707_v33  ;;  %v999_v28 = vld [vmem:[%s5307_s4 + $0x10] sm:$0xff] }
 0x198   : > { %2301 = vmatprep.subr.bf16.mxu0 %v3712_v34  ;;  %2414 = vmatprep.subr.bf16.mxu1 %v3715_v23 }
 0x19b   : > { %2302 = vmatpush2.bf16.msra.mxu0 %v3710_v31  ;;  %2415 = vmatpush2.bf16.msra.mxu1 %v3713_v36  ;;  %v1271_v31 = vpop.permute.xlu1 %1270 }
 0x19c   : > { %2303 = vmatprep.subr.bf16.mxu0 %v3718_v13  ;;  %2416 = vmatprep.subr.bf16.mxu1 %v3721_v14 }
 0x19d   : > { %1474 = vmatmul.mubr.bf16.gmra.mxu0 %v3642_v24  ;;  %1587 = vmatmul.mubr.bf16.gmra.mxu1 %v3642_v24 }
 0x19e   : > { %1483 = vmatprep.mubr.bf16.mxu0 %v5358_v52  ;;  %1596 = vmatprep.mubr.bf16.mxu1 %v5358_v52 }
 0x19f   : > { %2304 = vmatpush2.bf16.msra.mxu0 %v3716_v63  ;;  %2417 = vmatpush2.bf16.msra.mxu1 %v3719_v7 }
 0x1a0   : > { %2305 = vmatprep.subr.bf16.mxu0 %v3724_v21  ;;  %2418 = vmatprep.subr.bf16.mxu1 %v3727_v22 }
 0x1a3   : > { %2306 = vmatpush2.bf16.msra.mxu0 %v3722_v39  ;;  %2419 = vmatpush2.bf16.msra.mxu1 %v3725_v40 }
 0x1a4   : > { %2307 = vmatprep.subr.bf16.mxu0 %v3730_v43  ;;  %2420 = vmatprep.subr.bf16.mxu1 %v3733_v44 }
 0x1a5   : > { %1484 = vmatmul.mubr.bf16.gmra.mxu0 %v3643_v32  ;;  %1597 = vmatmul.mubr.bf16.gmra.mxu1 %v3643_v32 }
 0x1a7   : > { %2308 = vmatpush2.bf16.msra.mxu0 %v3728_v45  ;;  %2421 = vmatpush2.bf16.msra.mxu1 %v3731_v46 }
 0x1a8   : > { %2309 = vmatprep.subr.bf16.mxu0 %v3736_v50  ;;  %2422 = vmatprep.subr.bf16.mxu1 %v3739_v56  ;;  %v1009_v50 = vld [vmem:[%s5307_s4 + $0x60] sm:$0xff] }
 0x1ab   : > { %2310 = vmatpush2.bf16.msra.mxu0 %v3734_v51  ;;  %2423 = vmatpush2.bf16.msra.mxu1 %v3737_v53 }
 0x1ac   : > { %3352 = vmatprep.subr.bf16.mxu0 %v3740_v57  ;;  %3416 = vmatprep.subr.bf16.mxu1 %v3741_v58  ;;  %v3742_v58 = vld [vmem:[%s5308_s5 + $0xb0] ss:$12 sps:$4 sm:$0xff]  }
 0x22d   : > { %v1415_v1 = vpop.f32.mrf.mxu0  ;;  %v1528_v2 = vpop.f32.mrf.mxu1 }
 0x22e   : > { %v1416_v11 = vadd.f32 %v1415_v1, %v1256_v61  ;;  %v1529_v41 = vadd.f32 %v1528_v2, %v1256_v61  ;;  %v1005_v2 = vld [vmem:[%s5307_s4 + $0x40] sm:$0xff] }
 0x22f   : > { %v1417_v12 = vpop.f32.mrf.mxu0  ;;  %v1530_v16 = vpop.f32.mrf.mxu1 }
 0x230   : > { %v1418_v25 = vadd.f32 %v1417_v12, %v1256_v61  ;;  %v1531_v26 = vadd.f32 %v1530_v16, %v1256_v61  ;;  %v1607_v42 = vmax.f32 %v1416_v11, 0.0  ;;  %v1609_v17 = vmax.f32 %v1529_v41, 0.0  ;;  %v3743_v61 = vld [vmem:[%s5308_s5 + $0x230] ss:$12 sps:$4 sm:$0xff]   ;;  %v1010_v12 = vld [vmem:[%s5307_s4 + $0x68] sm:$0xff] }
 0x231   : > { %v1419_v29 = vpop.f32.mrf.mxu0  ;;  %v1532_v30 = vpop.f32.mrf.mxu1 }
 0x232   : > { %v1420_v47 = vadd.f32 %v1419_v29, %v1261_v37  ;;  %v1533_v49 = vadd.f32 %v1532_v30, %v1261_v37  ;;  %v1608_v19 = vmax.f32 %v1418_v25, 0.0  ;;  %v1610_v59 = vmax.f32 %v1531_v26, 0.0  ;;  %v1012_v25 = vld [vmem:[%s5307_s4 + $0x78] sm:$0xff] }
 0x233   : > { %v1421_v54 = vpop.f32.mrf.mxu0  ;;  %v1534_v55 = vpop.f32.mrf.mxu1  ;;  %v1671_v27 = vmul.f32 %v1607_v42, %v997_v62  ;;  %v1673_v40 = vmul.f32 %v1609_v17, %v999_v28  ;;  %v3744_v29 = vld [vmem:[%s5308_s5 + $0x158] ss:$12 sps:$4 sm:$0xff]   ;;  %v1006_v62 = vld [vmem:[%s5307_s4 + $0x48] sm:$0xff] }
 0x234   : > { %v1422_v48 = vadd.f32 %v1421_v54, %v1261_v37  ;;  %v1535_v5 = vadd.f32 %v1534_v55, %v1261_v37  ;;  %v1611_v3 = vmax.f32 %v1420_v47, 0.0  ;;  %v1613_v0 = vmax.f32 %v1533_v49, 0.0  ;;  %v3745_v49 = vld [vmem:[%s5308_s5 + $0x2d8] ss:$12 sps:$4 sm:$0xff]   ;;  %v1276_v54 = vpop.permute.xlu0 %1275 }
 0x235   : > { %v1425_v9 = vpop.f32.mrf.mxu0  ;;  %v1538_v10 = vpop.f32.mrf.mxu1  ;;  %v1672_v36 = vmul.f32 %v1608_v19, %v998_v15  ;;  %v1674_v14 = vmul.f32 %v1610_v59, %v1000_v18  ;;  %v1008_v15 = vld [vmem:[%s5307_s4 + $0x58] sm:$0xff]  ;;  %v1011_v19 = vld [vmem:[%s5307_s4 + $0x70] sm:$0xff] }
 0x236   : > { %v1612_v20 = vmax.f32 %v1422_v48, 0.0  ;;  %v1614_v35 = vmax.f32 %v1535_v5, 0.0  ;;  %v1675_v33 = vmul.f32 %v1611_v3, %v1001_v60  ;;  %v1677_v24 = vmul.f32 %v1613_v0, %v1003_v4  ;;  %v1007_v5 = vld [vmem:[%s5307_s4 + $0x50] sm:$0xff] }
 0x237   : > { %v1427_v34 = vpop.f32.mrf.mxu0  ;;  %v1540_v23 = vpop.f32.mrf.mxu1  ;;  %v1426_v63 = vadd.f32 %v1425_v9, %v1266_v38  ;;  %v1539_v43 = vadd.f32 %v1538_v10, %v1266_v38 }
 0x238   : > { %v1676_v32 = vmul.f32 %v1612_v20, %v1002_v6  ;;  %v1678_v13 = vmul.f32 %v1614_v35, %v1004_v8  ;;  %v1428_v7 = vadd.f32 %v1427_v34, %v1266_v38  ;;  %v1541_v21 = vadd.f32 %v1540_v23, %v1266_v38  ;;  %v3746_v6 = vld [vmem:[%s5308_s5 + $0x98] ss:$12 sps:$4 sm:$0xff]   ;;  %v1281_v8 = vpop.permute.xlu1 %1280  ;;  %v3748_v35 = vld [vmem:[%s5308_s5 + $0x140] ss:$12 sps:$4 sm:$0xff]  }
 0x239   : > { %v1429_v22 = vpop.f32.mrf.mxu0  ;;  %v1542_v39 = vpop.f32.mrf.mxu1  ;;  %v4564_v46 = vpack.c.bf16 %v1675_v33, %v1671_v27  ;;  %v4579_v1 = vpack.c.bf16 %v1677_v24, %v1673_v40  ;;  %v1615_v30 = vmax.f32 %v1426_v63, 0.0  ;;  %v1617_v55 = vmax.f32 %v1539_v43, 0.0  ;;  %v3747_v20 = vld [vmem:[%s5308_s5 + $0x218] ss:$12 sps:$4 sm:$0xff]  }
 0x23a   : > { %v1430_v44 = vadd.f32 %v1429_v22, %v1271_v31  ;;  %v1543_v45 = vadd.f32 %v1542_v39, %v1271_v31  ;;  %v4569_v56 = vpack.c.bf16 %v1676_v32, %v1672_v36  ;;  %v4571_v57 = vpack.c.bf16 %v1678_v13, %v1674_v14  ;;  %v1013_v24 = vld [vmem:[%s5307_s4 + $0x80] sm:$0xff]  ;;  %v1016_v22 = vld [vmem:[%s5307_s4 + $0x98] sm:$0xff] }
 0x23b   : > { %v1431_v51 = vpop.f32.mrf.mxu0  ;;  %v1544_v53 = vpop.f32.mrf.mxu1  ;;  %v1616_v37 = vmax.f32 %v1428_v7, 0.0  ;;  %v1618_v38 = vmax.f32 %v1541_v21, 0.0  ;;  %v1679_v27 = vmul.f32 %v1615_v30, %v1005_v2  ;;  %v1681_v36 = vmul.f32 %v1617_v55, %v1007_v5  ;;  %v1014_v7 = vld [vmem:[%s5307_s4 + $0x88] sm:$0xff]  ;;  %v1017_v2 = vld [vmem:[%s5307_s4 + $0xa0] sm:$0xff]  ;;  %v1015_v55 = vld [vmem:[%s5307_s4 + $0x90] sm:$0xff] }
 0x23c   : > { %v1619_v11 = vmax.f32 %v1430_v44, 0.0  ;;  %v1432_v16 = vadd.f32 %v1431_v51, %v1271_v31  ;;  %v1545_v26 = vadd.f32 %v1544_v53, %v1271_v31  ;;  %v1621_v41 = vmax.f32 %v1543_v45, 0.0  ;;  %2311 = vmatprep.mubr.bf16.mxu0 %v4569_v56  ;;  %2424 = vmatprep.mubr.bf16.mxu1 %v4571_v57  ;;  %v3749_v45 = vld [vmem:[%s5308_s5 + $0x2c0] ss:$12 sps:$4 sm:$0xff]  }
 0x23d   : > { %v1435_v42 = vpop.f32.mrf.mxu0  ;;  %v1548_v47 = vpop.f32.mrf.mxu1  ;;  %2312 = vmatmul.mubr.bf16.vlgmr.msra.gmra.mxu0 %v4564_v46  ;;  %2425 = vmatmul.mubr.bf16.vlgmr.msra.gmra.mxu1 %v4579_v1  ;;  %v1680_v28 = vmul.f32 %v1616_v37, %v1006_v62  ;;  %v1682_v33 = vmul.f32 %v1618_v38, %v1008_v15  ;;  %v3752_v37 = vld [vmem:[%s5308_s5 + $0x128] ss:$12 sps:$4 sm:$0xff]  }
 0x23e   : > { %v1620_v60 = vmax.f32 %v1432_v16, 0.0  ;;  %v1622_v48 = vmax.f32 %v1545_v26, 0.0  ;;  %v1683_v59 = vmul.f32 %v1619_v11, %v1009_v50  ;;  %v1436_v3 = vadd.f32 %v1435_v42, %v1276_v54  ;;  %3353 = vmatpush3.bf16.msra.mxu0 %v3742_v58  ;;  %3417 = vmatpush3.bf16.msra.mxu1 %v3743_v61  ;;  %v3750_v58 = vld [vmem:[%s5308_s5 + $0x80] ss:$12 sps:$4 sm:$0xff]   ;;  %v1019_v11 = vld [vmem:[%s5307_s4 + $0xb0] sm:$0xff]  ;;  %v1286_v38 = vpop.permute.xlu0 %1285 }
 0x23f   : > { %v1437_v4 = vpop.f32.mrf.mxu0  ;;  %v1550_v0 = vpop.f32.mrf.mxu1  ;;  %3354 = vmatprep.subr.bf16.mxu0 %v3744_v29  ;;  %v1685_v34 = vmul.f32 %v1621_v41, %v1011_v19  ;;  %3418 = vmatprep.subr.bf16.mxu1 %v3745_v49  ;;  %v1549_v32 = vadd.f32 %v1548_v47, %v1276_v54  ;;  %v3751_v61 = vld [vmem:[%s5308_s5 + $0x200] ss:$12 sps:$4 sm:$0xff]   ;;  %v1020_v47 = vld [vmem:[%s5307_s4 + $0xb8] sm:$0xff]  ;;  %v3753_v49 = vld [vmem:[%s5308_s5 + $0x2a8] ss:$12 sps:$4 sm:$0xff]  }
 0x240   : > { %v1684_v9 = vmul.f32 %v1620_v60, %v1010_v12  ;;  %v1686_v10 = vmul.f32 %v1622_v48, %v1012_v25  ;;  %v1438_v17 = vadd.f32 %v1437_v4, %v1276_v54  ;;  %v1551_v18 = vadd.f32 %v1550_v0, %v1276_v54  ;;  %v1018_v42 = vld [vmem:[%s5307_s4 + $0xa8] sm:$0xff] }
 0x241   : > { %v1439_v23 = vpop.f32.mrf.mxu0  ;;  %v1552_v31 = vpop.f32.mrf.mxu1  ;;  %v1623_v63 = vmax.f32 %v1436_v3, 0.0  ;;  %v4637_v53 = vpack.c.bf16 %v1683_v59, %v1679_v27  ;;  %v4653_v30 = vpack.c.bf16 %v1685_v34, %v1681_v36  ;;  %v1625_v41 = vmax.f32 %v1549_v32, 0.0  ;;  %v3754_v4 = vld [vmem:[%s5308_s5 + $0x68] ss:$12 sps:$4 sm:$0xff]  }
 0x242   : > { %v1440_v13 = vadd.f32 %v1439_v23, %v1281_v8  ;;  %v1553_v14 = vadd.f32 %v1552_v31, %v1281_v8  ;;  %v1624_v21 = vmax.f32 %v1438_v17, 0.0  ;;  %v4630_v43 = vpack.c.bf16 %v1684_v9, %v1680_v28  ;;  %3355 = vmatpush3.bf16.msra.mxu0 %v3746_v6  ;;  %3419 = vmatpush3.bf16.msra.mxu1 %v3747_v20  ;;  %v1022_v34 = vld [vmem:[%s5307_s4 + $0xc8] sm:$0xff]  ;;  %v1025_v23 = vld [vmem:[%s5307_s4 + $0xe0] sm:$0xff] }
 0x243   : > { %v1441_v39 = vpop.f32.mrf.mxu0  ;;  %v1554_v40 = vpop.f32.mrf.mxu1  ;;  %v4632_v44 = vpack.c.bf16 %v1686_v10, %v1682_v33  ;;  %v1626_v50 = vmax.f32 %v1551_v18, 0.0  ;;  %3356 = vmatprep.subr.bf16.mxu0 %v3748_v35  ;;  %v1687_v54 = vmul.f32 %v1623_v63, %v1013_v24  ;;  %3420 = vmatprep.subr.bf16.mxu1 %v3749_v45  ;;  %v1689_v20 = vmul.f32 %v1625_v41, %v1015_v55  ;;  %v3755_v33 = vld [vmem:[%s5308_s5 + $0x1e8] ss:$12 sps:$4 sm:$0xff]   ;;  %v3756_v63 = vld [vmem:[%s5308_s5 + $0x110] ss:$12 sps:$4 sm:$0xff]  }
 0x244   : > { %v1627_v51 = vmax.f32 %v1440_v13, 0.0  ;;  %v1629_v12 = vmax.f32 %v1553_v14, 0.0  ;;  %v1442_v16 = vadd.f32 %v1441_v39, %v1281_v8  ;;  %v1555_v25 = vadd.f32 %v1554_v40, %v1281_v8  ;;  %2321 = vmatprep.mubr.bf16.mxu0 %v4630_v43  ;;  %v1291_v18 = vpop.permute.xlu1 %1290 }
 0x245   : > { %2434 = vmatprep.mubr.bf16.mxu1 %v4632_v44  ;;  %v1445_v26 = vpop.f32.mrf.mxu0  ;;  %v1558_v29 = vpop.f32.mrf.mxu1  ;;  %2322 = vmatmul.mubr.bf16.gmra.mxu0 %v4637_v53  ;;  %v1688_v62 = vmul.f32 %v1624_v21, %v1014_v7  ;;  %v1690_v5 = vmul.f32 %v1626_v50, %v1016_v22  ;;  %v1024_v7 = vld [vmem:[%s5307_s4 + $0xd8] sm:$0xff]  ;;  %v1027_v21 = vld [vmem:[%s5307_s4 + $0xf0] sm:$0xff]  ;;  %v1026_v22 = vld [vmem:[%s5307_s4 + $0xe8] sm:$0xff] }
 0x246   : > { %v1628_v15 = vmax.f32 %v1442_v16, 0.0  ;;  %v1630_v19 = vmax.f32 %v1555_v25, 0.0  ;;  %2435 = vmatmul.mubr.bf16.gmra.mxu1 %v4653_v30  ;;  %v1691_v59 = vmul.f32 %v1627_v51, %v1017_v2  ;;  %3357 = vmatpush3.bf16.msra.mxu0 %v3750_v58  ;;  %v1693_v0 = vmul.f32 %v1629_v12, %v1019_v11  ;;  %v3757_v50 = vld [vmem:[%s5308_s5 + $0x290] ss:$12 sps:$4 sm:$0xff]  }
 0x247   : > { %v1447_v60 = vpop.f32.mrf.mxu0  ;;  %v1560_v48 = vpop.f32.mrf.mxu1  ;;  %3421 = vmatpush3.bf16.msra.mxu1 %v3751_v61  ;;  %3358 = vmatprep.subr.bf16.mxu0 %v3752_v37  ;;  %v4677_v35 = vadd.f32 %v1445_v26, %v1286_v38  ;;  %v4679_v27 = vadd.f32 %v1558_v29, %v1286_v38  ;;  %v3758_v51 = vld [vmem:[%s5308_s5 + $0x50] ss:$12 sps:$4 sm:$0xff]   ;;  %v3760_v26 = vld [vmem:[%s5308_s5 + $0xf8] ss:$12 sps:$4 sm:$0xff]  }
 0x248   : > { %v1448_v3 = vadd.f32 %v1447_v60, %v1286_v38  ;;  %v1692_v6 = vmul.f32 %v1628_v15, %v1018_v42  ;;  %v1694_v8 = vmul.f32 %v1630_v19, %v1020_v47  ;;  %v4675_v9 = vadd.f32 %v1560_v48, %v1286_v38  ;;  %3422 = vmatprep.subr.bf16.mxu1 %v3753_v49  ;;  %v1028_v11 = vld [vmem:[%s5307_s4 + $0xf8] sm:$0xff]  ;;  %v1296_v29 = vpop.permute.xlu0 %1295  ;;  %v1021_v49 = vld [vmem:[%s5307_s4 + $0xc0] sm:$0xff]  ;;  %v1301_v48 = vpop.permute.xlu1 %1300 }
 0x249   : > { %v1449_v10 = vpop.f32.mrf.mxu0  ;;  %v1562_v17 = vpop.f32.mrf.mxu1  ;;  %v4706_v45 = vpack.c.bf16 %v1691_v59, %v1687_v54  ;;  %v4720_v25 = vpack.c.bf16 %v1693_v0, %v1689_v20  ;;  %v1631_v37 = vmax.f32 %v4677_v35, 0.0  ;;  %v1633_v38 = vmax.f32 %v4679_v27, 0.0  ;;  %v3759_v47 = vld [vmem:[%s5308_s5 + $0x1d0] ss:$12 sps:$4 sm:$0xff]   ;;  %v3761_v60 = vld [vmem:[%s5308_s5 + $0x278] ss:$12 sps:$4 sm:$0xff]  }
 0x24a   : > { %v1632_v28 = vmax.f32 %v1448_v3, 0.0  ;;  %v1450_v31 = vadd.f32 %v1449_v10, %v1291_v18  ;;  %v1563_v36 = vadd.f32 %v1562_v17, %v1291_v18  ;;  %v4690_v13 = vpack.c.bf16 %v1692_v6, %v1688_v62  ;;  %3359 = vmatpush3.bf16.msra.mxu0 %v3754_v4  ;;  %v1023_v54 = vld [vmem:[%s5307_s4 + $0xd0] sm:$0xff]  ;;  %v3762_v4 = vld [vmem:[%s5308_s5 + $0x38] ss:$12 sps:$4 sm:$0xff]  }
 0x24b   : > { %v1451_v24 = vpop.f32.mrf.mxu0  ;;  %v1564_v32 = vpop.f32.mrf.mxu1  ;;  %v4692_v14 = vpack.c.bf16 %v1694_v8, %v1690_v5  ;;  %v1634_v58 = vmax.f32 %v4675_v9, 0.0  ;;  %3423 = vmatpush3.bf16.msra.mxu1 %v3755_v33  ;;  %3360 = vmatprep.subr.bf16.mxu0 %v3756_v63  ;;  %v1697_v20 = vmul.f32 %v1633_v38, %v1023_v54  ;;  %v1029_v33 = vld [vmem:[%s5307_s4 + $0x100] sm:$0xff] }
 0x24c   : > { %v1452_v39 = vadd.f32 %v1451_v24, %v1291_v18  ;;  %v1565_v40 = vadd.f32 %v1564_v32, %v1291_v18  ;;  %v1635_v61 = vmax.f32 %v1450_v31, 0.0  ;;  %v1637_v2 = vmax.f32 %v1563_v36, 0.0  ;;  %2331 = vmatprep.mubr.bf16.mxu0 %v4690_v13  ;;  %3424 = vmatprep.subr.bf16.mxu1 %v3757_v50  ;;  %v1033_v31 = vld [vmem:[%s5307_s4 + $0x120] sm:$0xff]  ;;  %v1034_v50 = vld [vmem:[%s5307_s4 + $0x128] sm:$0xff] }
 0x24d   : > { %2444 = vmatprep.mubr.bf16.mxu1 %v4692_v14  ;;  %v1455_v12 = vpop.f32.mrf.mxu0  ;;  %v1568_v16 = vpop.f32.mrf.mxu1  ;;  %2332 = vmatmul.mubr.bf16.gmra.mxu0 %v4706_v45  ;;  %v1696_v55 = vmul.f32 %v1632_v28, %v1022_v34  ;;  %v1698_v0 = vmul.f32 %v1634_v58, %v1024_v7  ;;  %v1695_v18 = vmul.f32 %v1631_v37, %v1021_v49  ;;  %v3763_v28 = vld [vmem:[%s5308_s5 + $0x1b8] ss:$12 sps:$4 sm:$0xff]   ;;  %v3764_v7 = vld [vmem:[%s5308_s5 + $0xe0] ss:$12 sps:$4 sm:$0xff]  }
 0x24e   : > { %v1636_v41 = vmax.f32 %v1452_v39, 0.0  ;;  %v1638_v42 = vmax.f32 %v1565_v40, 0.0  ;;  %v4737_v62 = vadd.f32 %v1455_v12, %v1296_v29  ;;  %2445 = vmatmul.mubr.bf16.gmra.mxu1 %v4720_v25  ;;  %v1699_v5 = vmul.f32 %v1635_v61, %v1025_v23  ;;  %3361 = vmatpush3.bf16.msra.mxu0 %v3758_v51  ;;  %v1035_v40 = vld [vmem:[%s5307_s4 + $0x130] sm:$0xff]  ;;  %v3767_v54 = vld [vmem:[%s5308_s5 + $0x1a0] ss:$12 sps:$4 sm:$0xff]  }
 0x24f   : > { %v1457_v15 = vpop.f32.mrf.mxu0  ;;  %v1570_v19 = vpop.f32.mrf.mxu1  ;;  %v1701_v6 = vmul.f32 %v1637_v2, %v1027_v21  ;;  %3362 = vmatprep.subr.bf16.mxu0 %v3760_v26  ;;  %3425 = vmatpush3.bf16.msra.mxu1 %v3759_v47  ;;  %v4757_v23 = vadd.f32 %v1568_v16, %v1296_v29  ;;  %v1030_v21 = vld [vmem:[%s5307_s4 + $0x108] sm:$0xff]  ;;  %v1036_v26 = vld [vmem:[%s5307_s4 + $0x138] sm:$0xff] }
 0x250   : > { %v1700_v59 = vmul.f32 %v1636_v41, %v1026_v22  ;;  %v1702_v3 = vmul.f32 %v1638_v42, %v1028_v11  ;;  %v4746_v8 = vadd.f32 %v1457_v15, %v1296_v29  ;;  %v4748_v9 = vadd.f32 %v1570_v19, %v1296_v29  ;;  %3426 = vmatprep.subr.bf16.mxu1 %v3761_v60  ;;  %v1032_v22 = vld [vmem:[%s5307_s4 + $0x118] sm:$0xff]  ;;  %v3765_v2 = vld [vmem:[%s5308_s5 + $0x260] ss:$12 sps:$4 sm:$0xff]   ;;  %v1306_v42 = vpop.permute.xlu0 %1305 }
 0x251   : > { %v1459_v10 = vpop.f32.mrf.mxu0  ;;  %v1572_v17 = vpop.f32.mrf.mxu1  ;;  %v1639_v34 = vmax.f32 %v4737_v62, 0.0  ;;  %v4781_v61 = vpack.c.bf16 %v1699_v5, %v1695_v18  ;;  %v4793_v38 = vpack.c.bf16 %v1701_v6, %v1697_v20  ;;  %v3766_v41 = vld [vmem:[%s5308_s5 + $0x20] ss:$12 sps:$4 sm:$0xff]   ;;  %v1641_v15 = vmax.f32 %v4757_v23, 0.0  ;;  %v3769_v5 = vld [vmem:[%s5308_s5 + $0x248] ss:$12 sps:$4 sm:$0xff]  }
 0x252   : > { %v1460_v35 = vadd.f32 %v1459_v10, %v1301_v48  ;;  %v1573_v27 = vadd.f32 %v1572_v17, %v1301_v48  ;;  %v4762_v32 = vpack.c.bf16 %v1700_v59, %v1696_v55  ;;  %v4764_v63 = vpack.c.bf16 %v1702_v3, %v1698_v0  ;;  %3363 = vmatpush3.bf16.msra.mxu0 %v3762_v4  ;;  %v3768_v55 = vld [vmem:[%s5308_s5 + $0xc8] ss:$12 sps:$4 sm:$0xff]   ;;  %v1311_v59 = vpop.permute.xlu1 %1310 }
 0x253   : > { %v1461_v36 = vpop.f32.mrf.mxu0  ;;  %v1574_v24 = vpop.f32.mrf.mxu1  ;;  %v1640_v11 = vmax.f32 %v4746_v8, 0.0  ;;  %v1642_v12 = vmax.f32 %v4748_v9, 0.0  ;;  %3427 = vmatpush3.bf16.msra.mxu1 %v3763_v28  ;;  %v1703_v62 = vmul.f32 %v1639_v34, %v1029_v33  ;;  %3364 = vmatprep.subr.bf16.mxu0 %v3764_v7  ;;  %v1031_v3 = vld [vmem:[%s5307_s4 + $0x110] sm:$0xff] }
 0x254   : > { %v1643_v39 = vmax.f32 %v1460_v35, 0.0  ;;  %v1462_v51 = vadd.f32 %v1461_v36, %v1301_v48  ;;  %v1575_v58 = vadd.f32 %v1574_v24, %v1301_v48  ;;  %v1645_v16 = vmax.f32 %v1573_v27, 0.0  ;;  %2341 = vmatprep.mubr.bf16.mxu0 %v4762_v32  ;;  %2454 = vmatprep.mubr.bf16.mxu1 %v4764_v63  ;;  %v3770_v7 = vld [vmem:[%s5308_s5 + $0x8] ss:$12 sps:$4 sm:$0xff]  }
 0x255   : > { %v1465_v29 = vpop.f32.mrf.mxu0  ;;  %v1578_v37 = vpop.f32.mrf.mxu1  ;;  %2342 = vmatmul.mubr.bf16.gmra.mxu0 %v4781_v61  ;;  %3428 = vmatprep.subr.bf16.mxu1 %v3765_v2  ;;  %v1704_v9 = vmul.f32 %v1640_v11, %v1030_v21  ;;  %v1706_v10 = vmul.f32 %v1642_v12, %v1032_v22  ;;  %v1705_v34 = vmul.f32 %v1641_v15, %v1031_v3  ;;  %v1040_v2 = vld [vmem:[%s5307_s4 + $0x158] sm:$0xff]  ;;  %v1041_v11 = vld [vmem:[%s5307_s4 + $0x160] sm:$0xff] }
 0x256   : > { %v1644_v47 = vmax.f32 %v1462_v51, 0.0  ;;  %v1646_v49 = vmax.f32 %v1575_v58, 0.0  ;;  %v1707_v19 = vmul.f32 %v1643_v39, %v1033_v31  ;;  %2455 = vmatmul.mubr.bf16.gmra.mxu1 %v4793_v38  ;;  %v1709_v17 = vmul.f32 %v1645_v16, %v1035_v40  ;;  %3365 = vmatpush3.bf16.msra.mxu0 %v3766_v41  ;;  %v1316_v21 = vpop.permute.xlu0 %1315  ;;  %v3771_v51 = vld [vmem:[%s5308_s5 + $0x188] ss:$12 sps:$4 sm:$0xff]  }
 0x257   : > { %v1467_v60 = vpop.f32.mrf.mxu0  ;;  %v1580_v48 = vpop.f32.mrf.mxu1  ;;  %v1466_v18 = vadd.f32 %v1465_v29, %v1306_v42  ;;  %v1579_v27 = vadd.f32 %v1578_v37, %v1306_v42  ;;  %3429 = vmatpush3.bf16.msra.mxu1 %v3767_v54  ;;  %3366 = vmatprep.subr.bf16.mxu0 %v3768_v55  ;;  %v1038_v58 = vld [vmem:[%s5307_s4 + $0x148] sm:$0xff]  ;;  %v1044_v55 = vld [vmem:[%s5307_s4 + $0x178] sm:$0xff] }
 0x258   : > { %v1708_v4 = vmul.f32 %v1644_v47, %v1034_v50  ;;  %v1710_v0 = vmul.f32 %v1646_v49, %v1036_v26  ;;  %v1468_v6 = vadd.f32 %v1467_v60, %v1306_v42  ;;  %v1581_v8 = vadd.f32 %v1580_v48, %v1306_v42  ;;  %3430 = vmatprep.subr.bf16.mxu1 %v3769_v5  ;;  %v1043_v49 = vld [vmem:[%s5307_s4 + $0x170] sm:$0xff]  ;;  %v1042_v54 = vld [vmem:[%s5307_s4 + $0x168] sm:$0xff] }
 0x259   : > { %v1469_v20 = vpop.f32.mrf.mxu0  ;;  %v1582_v35 = vpop.f32.mrf.mxu1  ;;  %v4820_v50 = vpack.c.bf16 %v1707_v19, %v1703_v62  ;;  %v4836_v41 = vpack.c.bf16 %v1709_v17, %v1705_v34  ;;  %v1647_v42 = vmax.f32 %v1466_v18, 0.0  ;;  %v1649_v47 = vmax.f32 %v1579_v27, 0.0  ;;  %v1037_v19 = vld [vmem:[%s5307_s4 + $0x140] sm:$0xff]  ;;  %v1039_v60 = vld [vmem:[%s5307_s4 + $0x150] sm:$0xff] }
 0x25a   : > { %v1470_v28 = vadd.f32 %v1469_v20, %v1311_v59  ;;  %v1583_v33 = vadd.f32 %v1582_v35, %v1311_v59  ;;  %v4813_v36 = vpack.c.bf16 %v1708_v4, %v1704_v9  ;;  %v4815_v24 = vpack.c.bf16 %v1710_v0, %v1706_v10  ;;  %3367 = vmatpush3.bf16.msra.mxu0 %v3770_v7  ;;  %v1321_v27 = vpop.permute.xlu1 %1320 }
 0x25b   : > { %v1471_v23 = vpop.f32.mrf.mxu0  ;;  %v1584_v31 = vpop.f32.mrf.mxu1  ;;  %v1648_v22 = vmax.f32 %v1468_v6, 0.0  ;;  %v1650_v39 = vmax.f32 %v1581_v8, 0.0  ;;  %3431 = vmatpush3.bf16.msra.mxu1 %v3771_v51  ;;  %v1047_v51 = vld [vmem:[%s5307_s4 + $0x190] sm:$0xff] }
 0x25c   : > { %v1651_v40 = vmax.f32 %v1470_v28, 0.0  ;;  %v1653_v12 = vmax.f32 %v1583_v33, 0.0  ;;  %v1472_v16 = vadd.f32 %v1471_v23, %v1311_v59  ;;  %v1585_v26 = vadd.f32 %v1584_v31, %v1311_v59  ;;  %2351 = vmatprep.mubr.bf16.mxu0 %v4813_v36  ;;  %2464 = vmatprep.mubr.bf16.mxu1 %v4815_v24 }
 0x25d   : > { %v1475_v29 = vpop.f32.mrf.mxu0  ;;  %v1588_v37 = vpop.f32.mrf.mxu1  ;;  %2352 = vmatmul.mubr.bf16.gmra.mxu0 %v4820_v50  ;;  %v1712_v4 = vmul.f32 %v1648_v22, %v1038_v58  ;;  %v1714_v0 = vmul.f32 %v1650_v39, %v1040_v2  ;;  %v1711_v28 = vmul.f32 %v1647_v42, %v1037_v19  ;;  %v1713_v33 = vmul.f32 %v1649_v47, %v1039_v60  ;;  %v1049_v2 = vld [vmem:[%s5307_s4 + $0x1a0] sm:$0xff]  ;;  %v1048_v19 = vld [vmem:[%s5307_s4 + $0x198] sm:$0xff]  ;;  %v1051_v60 = vld [vmem:[%s5307_s4 + $0x1b0] sm:$0xff] }
 0x25e   : > { %v1476_v62 = vadd.f32 %v1475_v29, %v1316_v21  ;;  %v4847_v15 = vadd.f32 %v1588_v37, %v1316_v21  ;;  %v1652_v48 = vmax.f32 %v1472_v16, 0.0  ;;  %v1654_v5 = vmax.f32 %v1585_v26, 0.0  ;;  %2465 = vmatmul.mubr.bf16.gmra.mxu1 %v4836_v41  ;;  %v1046_v29 = vld [vmem:[%s5307_s4 + $0x188] sm:$0xff] }
 0x25f   : > { %v1477_v59 = vpop.f32.mrf.mxu0  ;;  %v1590_v3 = vpop.f32.mrf.mxu1  ;;  %v1715_v6 = vmul.f32 %v1651_v40, %v1041_v11  ;;  %v1717_v9 = vmul.f32 %v1653_v12, %v1043_v49  ;;  %v1050_v49 = vld [vmem:[%s5307_s4 + $0x1a8] sm:$0xff] }
 0x260   : > { %v1478_v8 = vadd.f32 %v1477_v59, %v1316_v21  ;;  %v1716_v10 = vmul.f32 %v1652_v48, %v1042_v54  ;;  %v1718_v17 = vmul.f32 %v1654_v5, %v1044_v55  ;;  %v1591_v18 = vadd.f32 %v1590_v3, %v1316_v21  ;;  %v1045_v21 = vld [vmem:[%s5307_s4 + $0x180] sm:$0xff]  ;;  %v1052_v54 = vld [vmem:[%s5307_s4 + $0x1b8] sm:$0xff] }
 0x261   : > { %v1479_v20 = vpop.f32.mrf.mxu0  ;;  %v1592_v35 = vpop.f32.mrf.mxu1  ;;  %v1655_v34 = vmax.f32 %v1476_v62, 0.0  ;;  %v1657_v23 = vmax.f32 %v4847_v15, 0.0  ;;  %v4871_v26 = vpack.c.bf16 %v1715_v6, %v1711_v28  ;;  %v4884_v15 = vpack.c.bf16 %v1717_v9, %v1713_v33 }
 0x262   : > { %v1480_v31 = vadd.f32 %v1479_v20, %v1321_v27  ;;  %v1593_v16 = vadd.f32 %v1592_v35, %v1321_v27  ;;  %v4858_v39 = vpack.c.bf16 %v1716_v10, %v1712_v4  ;;  %v4860_v40 = vpack.c.bf16 %v1718_v17, %v1714_v0  ;;  %v1326_v6 = vpop.permute.xlu0 %1325 }
 0x263   : > { %v1481_v7 = vpop.f32.mrf.mxu0  ;;  %v1594_v22 = vpop.f32.mrf.mxu1  ;;  %v1656_v58 = vmax.f32 %v1478_v8, 0.0  ;;  %v1658_v37 = vmax.f32 %v1591_v18, 0.0  ;;  %v1719_v59 = vmul.f32 %v1655_v34, %v1045_v21  ;;  %v1721_v9 = vmul.f32 %v1657_v23, %v1047_v51  ;;  %v1054_v51 = vld [vmem:[%s5307_s4 + $0x1c8] sm:$0xff] }
 0x264   : > { %v1482_v11 = vadd.f32 %v1481_v7, %v1321_v27  ;;  %v1595_v12 = vadd.f32 %v1594_v22, %v1321_v27  ;;  %v1659_v42 = vmax.f32 %v1480_v31, 0.0  ;;  %v1661_v47 = vmax.f32 %v1593_v16, 0.0  ;;  %2361 = vmatprep.mubr.bf16.mxu0 %v4858_v39  ;;  %2474 = vmatprep.mubr.bf16.mxu1 %v4860_v40  ;;  %v1331_v8 = vpop.permute.xlu1 %1330 }
 0x265   : > { %v1485_v55 = vpop.f32.mrf.mxu0  ;;  %v1598_v62 = vpop.f32.mrf.mxu1  ;;  %2362 = vmatmul.mubr.bf16.gmra.mxu0 %v4871_v26  ;;  %v1720_v10 = vmul.f32 %v1656_v58, %v1046_v29  ;;  %v1722_v20 = vmul.f32 %v1658_v37, %v1048_v19  ;;  %v1056_v58 = vld [vmem:[%s5307_s4 + $0x1d8] sm:$0xff] }
 0x266   : > { %v1660_v48 = vmax.f32 %v1482_v11, 0.0  ;;  %v1662_v5 = vmax.f32 %v1595_v12, 0.0  ;;  %v1723_v3 = vmul.f32 %v1659_v42, %v1049_v2  ;;  %2475 = vmatmul.mubr.bf16.gmra.mxu1 %v4884_v15  ;;  %v1725_v35 = vmul.f32 %v1661_v47, %v1051_v60  ;;  %v1060_v19 = vld [vmem:[%s5307_s4 + $0x1f8] sm:$0xff] }
 0x267   : > { %v1487_v4 = vpop.f32.mrf.mxu0  ;;  %v1600_v0 = vpop.f32.mrf.mxu1  ;;  %v1486_v16 = vadd.f32 %v1485_v55, %v1326_v6  ;;  %v1599_v7 = vadd.f32 %v1598_v62, %v1326_v6  ;;  %v1058_v62 = vld [vmem:[%s5307_s4 + $0x1e8] sm:$0xff] }
 0x268   : > { %v1724_v17 = vmul.f32 %v1660_v48, %v1050_v49  ;;  %v1726_v18 = vmul.f32 %v1662_v5, %v1052_v54  ;;  %v1488_v27 = vadd.f32 %v1487_v4, %v1326_v6  ;;  %v1601_v28 = vadd.f32 %v1600_v0, %v1326_v6  ;;  %v1057_v54 = vld [vmem:[%s5307_s4 + $0x1e0] sm:$0xff]  ;;  %v1059_v5 = vld [vmem:[%s5307_s4 + $0x1f0] sm:$0xff] }
 0x269   : > { %v1489_v33 = vpop.f32.mrf.mxu0  ;;  %v1602_v31 = vpop.f32.mrf.mxu1  ;;  %v4898_v23 = vpack.c.bf16 %v1723_v3, %v1719_v59  ;;  %v1761_v60 = vpack.c.bf16 %v1725_v35, %v1721_v9  ;;  %v1663_v48 = vmax.f32 %v1486_v16, 0.0  ;;  %v1053_v4 = vld [vmem:[%s5307_s4 + $0x1c0] sm:$0xff]  ;;  %v1665_v0 = vmax.f32 %v1599_v7, 0.0 }
 0x26a   : > { %v1490_v34 = vadd.f32 %v1489_v33, %v1331_v8  ;;  %v1603_v22 = vadd.f32 %v1602_v31, %v1331_v8  ;;  %v1664_v21 = vmax.f32 %v1488_v27, 0.0  ;;  %v4894_v12 = vpack.c.bf16 %v1724_v17, %v1720_v10 }
 0x26b   : > { %v1491_v2 = vpop.f32.mrf.mxu0  ;;  %v1604_v11 = vpop.f32.mrf.mxu1  ;;  %v4896_v42 = vpack.c.bf16 %v1726_v18, %v1722_v20  ;;  %v1666_v29 = vmax.f32 %v1601_v28, 0.0  ;;  %v1727_v35 = vmul.f32 %v1663_v48, %v1053_v4 }
 0x26c   : > { %v1667_v37 = vmax.f32 %v1490_v34, 0.0  ;;  %v1492_v47 = vadd.f32 %v1491_v2, %v1331_v8  ;;  %v1605_v49 = vadd.f32 %v1604_v11, %v1331_v8  ;;  %v1669_v55 = vmax.f32 %v1603_v22, 0.0  ;;  %2371 = vmatprep.mubr.bf16.mxu0 %v4894_v12  ;;  %v1055_v8 = vld [vmem:[%s5307_s4 + $0x1d0] sm:$0xff] }
 0x26d   : > { %2484 = vmatprep.mubr.bf16.mxu1 %v4896_v42  ;;  %2372 = vmatmul.mubr.bf16.gmra.mxu0 %v4898_v23  ;;  %v1728_v6 = vmul.f32 %v1664_v21, %v1054_v51  ;;  %v1730_v9 = vmul.f32 %v1666_v29, %v1056_v58  ;;  %v1729_v33 = vmul.f32 %v1665_v0, %v1055_v8 }
 0x26e   : > { %v1668_v59 = vmax.f32 %v1492_v47, 0.0  ;;  %v1670_v3 = vmax.f32 %v1605_v49, 0.0  ;;  %2485 = vmatmul.mubr.bf16.gmra.mxu1 %v1761_v60  ;;  %v1731_v10 = vmul.f32 %v1667_v37, %v1057_v54  ;;  %v1733_v20 = vmul.f32 %v1669_v55, %v1059_v5 }
 0x270   : > { %v1732_v17 = vmul.f32 %v1668_v59, %v1058_v62  ;;  %v1734_v18 = vmul.f32 %v1670_v3, %v1060_v19  ;;  %v1763_v31 = vpack.c.bf16 %v1731_v10, %v1727_v35  ;;  %v1765_v16 = vpack.c.bf16 %v1733_v20, %v1729_v33 }
 0x272   : > { %v1764_v27 = vpack.c.bf16 %v1732_v17, %v1728_v6  ;;  %v1766_v28 = vpack.c.bf16 %v1734_v18, %v1730_v9 }
 0x274   : > { %2381 = vmatprep.mubr.bf16.mxu0 %v1764_v27  ;;  %2494 = vmatprep.mubr.bf16.mxu1 %v1766_v28 }
 0x275   : > { %2382 = vmatmul.mubr.bf16.gmra.mxu0 %v1763_v31 }
 0x276   : > { %2495 = vmatmul.mubr.bf16.gmra.mxu1 %v1765_v16  ;;  %2537 = vmatprep.mubr.bf16.mxu0 %v4569_v56 }
 0x277   : > { %2634 = vmatprep.mubr.bf16.mxu1 %v4571_v57 }
 0x27d   : > { %2538 = vmatmul.mubr.bf16.vlgmr.msra.gmra.mxu0 %v4564_v46  ;;  %v4958_v46 = vld [vmem:[%s5309_s6] sm:$0xff]  }
 0x27e   : > { %2635 = vmatmul.mubr.bf16.vlgmr.msra.gmra.mxu1 %v4579_v1  ;;  %2545 = vmatprep.mubr.bf16.mxu0 %v4630_v43  ;;  %5359 = vst [vmem:[#allocation4_spill] sm:$0xff] %v4958_v46 }
 0x27f   : > { %2642 = vmatprep.mubr.bf16.mxu1 %v4632_v44 }
 0x285   : > { %2546 = vmatmul.mubr.bf16.gmra.mxu0 %v4637_v53 }
 0x286   : > { %2643 = vmatmul.mubr.bf16.gmra.mxu1 %v4653_v30  ;;  %2553 = vmatprep.mubr.bf16.mxu0 %v4690_v13 }
 0x287   : > { %2650 = vmatprep.mubr.bf16.mxu1 %v4692_v14 }
 0x28d   : > { %2554 = vmatmul.mubr.bf16.gmra.mxu0 %v4706_v45 }
 0x28e   : > { %2651 = vmatmul.mubr.bf16.gmra.mxu1 %v4720_v25  ;;  %2561 = vmatprep.mubr.bf16.mxu0 %v4762_v32 }
 0x28f   : > { %2658 = vmatprep.mubr.bf16.mxu1 %v4764_v63 }
 0x295   : > { %2562 = vmatmul.mubr.bf16.gmra.mxu0 %v4781_v61 }
 0x296   : > { %2659 = vmatmul.mubr.bf16.gmra.mxu1 %v4793_v38  ;;  %2569 = vmatprep.mubr.bf16.mxu0 %v4813_v36 }
 0x297   : > { %2666 = vmatprep.mubr.bf16.mxu1 %v4815_v24 }
 0x29d   : > { %2570 = vmatmul.mubr.bf16.gmra.mxu0 %v4820_v50 }
 0x29e   : > { %2667 = vmatmul.mubr.bf16.gmra.mxu1 %v4836_v41  ;;  %2577 = vmatprep.mubr.bf16.mxu0 %v4858_v39 }
 0x29f   : > { %2674 = vmatprep.mubr.bf16.mxu1 %v4860_v40 }
 0x2a5   : > { %2578 = vmatmul.mubr.bf16.gmra.mxu0 %v4871_v26 }
 0x2a6   : > { %2675 = vmatmul.mubr.bf16.gmra.mxu1 %v4884_v15  ;;  %2585 = vmatprep.mubr.bf16.mxu0 %v4894_v12 }
 0x2a7   : > { %2682 = vmatprep.mubr.bf16.mxu1 %v4896_v42 }
 0x2ad   : > { %2586 = vmatmul.mubr.bf16.gmra.mxu0 %v4898_v23 }
 0x2ae   : > { %2683 = vmatmul.mubr.bf16.gmra.mxu1 %v1761_v60  ;;  %2593 = vmatprep.mubr.bf16.mxu0 %v1764_v27 }
 0x2af   : > { %2690 = vmatprep.mubr.bf16.mxu1 %v1766_v28 }
 0x2b5   : > { %2594 = vmatmul.mubr.bf16.gmra.mxu0 %v1763_v31 }
 0x2b6   : > { %2691 = vmatmul.mubr.bf16.gmra.mxu1 %v1765_v16  ;;  %2883 = vmatprep.mubr.bf16.mxu0 %v5358_v52 }
 0x2b7   : > { %3512 = vmatprep.mubr.bf16.mxu1 %v4958_v46 }
 0x2fd   : > { %v2313_v56 = vpop.f32.mrf.mxu0  ;;  %v2426_v57 = vpop.f32.mrf.mxu1 }
 0x2fe   : > { %v4961_v1 = vadd.f32 %v2426_v57, %v2313_v56 }
 0x2ff   : > { %v2315_v43 = vpop.f32.mrf.mxu0  ;;  %v2428_v44 = vpop.f32.mrf.mxu1 }
 0x300   : > { %5360 = vst [vmem:[#allocation7_spill] sm:$0xff] %v4961_v1  ;;  %v4963_v53 = vadd.f32 %v2428_v44, %v2315_v43 }
 0x301   : > { %v2317_v30 = vpop.f32.mrf.mxu0  ;;  %v2430_v13 = vpop.f32.mrf.mxu1 }
 0x302   : > { %5361 = vst [vmem:[#allocation10_spill] sm:$0xff] %v4963_v53  ;;  %v4965_v14 = vadd.f32 %v2430_v13, %v2317_v30 }
 0x303   : > { %v2319_v45 = vpop.f32.mrf.mxu0  ;;  %v2432_v25 = vpop.f32.mrf.mxu1 }
 0x304   : > { %5362 = vst [vmem:[#allocation8_spill] sm:$0xff] %v4965_v14  ;;  %v4969_v63 = vadd.f32 %v2432_v25, %v2319_v45 }
 0x305   : > { %v2323_v61 = vpop.f32.mrf.mxu0 }
 0x306   : > { %5363 = vst [vmem:[#allocation11_spill] sm:$0xff] %v4969_v63  ;;  %v2436_v36 = vpop.f32.mrf.mxu1 }
 0x307   : > { %v4973_v24 = vadd.f32 %v2436_v36, %v2323_v61  ;;  %v2325_v50 = vpop.f32.mrf.mxu0 }
 0x308   : > { %v2438_v41 = vpop.f32.mrf.mxu1 }
 0x309   : > { %5364 = vst [vmem:[#allocation9_spill] sm:$0xff] %v4973_v24  ;;  %v4975_v39 = vadd.f32 %v2438_v41, %v2325_v50  ;;  %v2327_v40 = vpop.f32.mrf.mxu0 }
 0x30a   : > { %v2440_v26 = vpop.f32.mrf.mxu1 }
 0x30b   : > { %5365 = vst [vmem:[#allocation5_spill] sm:$0xff] %v4975_v39  ;;  %v4977_v15 = vadd.f32 %v2440_v26, %v2327_v40  ;;  %v2329_v7 = vpop.f32.mrf.mxu0 }
 0x30c   : > { %v2442_v34 = vpop.f32.mrf.mxu1 }
 0x30d   : > { %5366 = vst [vmem:[#allocation2_spill] sm:$0xff] %v4977_v15  ;;  %v4981_v21 = vadd.f32 %v2442_v34, %v2329_v7  ;;  %v2333_v2 = vpop.f32.mrf.mxu0 }
 0x30e   : > { %v2446_v11 = vpop.f32.mrf.mxu1 }
 0x30f   : > { %5367 = vst [vmem:[#allocation6_spill] sm:$0xff] %v4981_v21  ;;  %v4985_v42 = vadd.f32 %v2446_v11, %v2333_v2  ;;  %v4987_v23 = vpop.f32.mrf.mxu0 }
 0x310   : > { %v4989_v51 = vpop.f32.mrf.mxu1 }
 0x311   : > { %5368 = vst [vmem:[#allocation3_spill] sm:$0xff] %v4985_v42  ;;  %v4991_v58 = vpop.f32.mrf.mxu0 }
 0x312   : > { %v4993_v29 = vpop.f32.mrf.mxu1 }
 0x313   : > { %v4995_v37 = vpop.f32.mrf.mxu0 }
 0x314   : > { %v4997_v47 = vpop.f32.mrf.mxu1 }
 0x315   : > { %v4999_v49 = vpop.f32.mrf.mxu0 }
 0x316   : > { %v5001_v54 = vpop.f32.mrf.mxu1 }
 0x317   : > { %v5003_v55 = vpop.f32.mrf.mxu0 }
 0x318   : > { %v5005_v62 = vpop.f32.mrf.mxu1 }
 0x319   : > { %v5007_v19 = vpop.f32.mrf.mxu0 }
 0x31a   : > { %v5009_v60 = vpop.f32.mrf.mxu1 }
 0x31b   : > { %v5011_v48 = vpop.f32.mrf.mxu0 }
 0x31c   : > { %v5013_v5 = vpop.f32.mrf.mxu1 }
 0x31d   : > { %v5015_v59 = vpop.f32.mrf.mxu0 }
 0x31e   : > { %v5017_v3 = vpop.f32.mrf.mxu1 }
 0x31f   : > { %v5019_v4 = vpop.f32.mrf.mxu0 }
 0x320   : > { %v5021_v0 = vpop.f32.mrf.mxu1 }
 0x321   : > { %v5023_v6 = vpop.f32.mrf.mxu0 }
 0x322   : > { %v5025_v8 = vpop.f32.mrf.mxu1 }
 0x323   : > { %v2359_v9 = vpop.f32.mrf.mxu0 }
 0x324   : > { %v2472_v10 = vpop.f32.mrf.mxu1 }
 0x325   : > { %v2363_v17 = vpop.f32.mrf.mxu0 }
 0x326   : > { %v2476_v18 = vpop.f32.mrf.mxu1 }
 0x327   : > { %v2365_v20 = vpop.f32.mrf.mxu0 }
 0x328   : > { %v2478_v35 = vpop.f32.mrf.mxu1 }
 0x329   : > { %v2367_v27 = vpop.f32.mrf.mxu0 }
 0x32a   : > { %v2480_v28 = vpop.f32.mrf.mxu1 }
 0x32b   : > { %v2369_v33 = vpop.f32.mrf.mxu0 }
 0x32c   : > { %v2482_v31 = vpop.f32.mrf.mxu1 }
 0x32d   : > { %v2373_v16 = vpop.f32.mrf.mxu0  ;;  %v2483_v15 = vadd.f32 %v2482_v31, %v2369_v33  ;;  %v2477_v33 = vadd.f32 %v2476_v18, %v2363_v17  ;;  %v2459_v17 = vadd.f32 %v5005_v62, %v5003_v55  ;;  %v2461_v18 = vadd.f32 %v5009_v60, %v5007_v19 }
 0x32e   : > { %v2486_v56 = vpop.f32.mrf.mxu1  ;;  %v2449_v55 = vadd.f32 %v4989_v51, %v4987_v23  ;;  %v2451_v60 = vadd.f32 %v4993_v29, %v4991_v58  ;;  %v5369_v51 = vld [vmem:[#allocation3_spill] sm:$0xff] }
 0x32f   : > { %v2375_v57 = vpop.f32.mrf.mxu0 }
 0x330   : > { %v2488_v43 = vpop.f32.mrf.mxu1 }
 0x331   : > { %v2377_v44 = vpop.f32.mrf.mxu0  ;;  %v2489_v52 = vadd.f32 %v2488_v43, %v2375_v57 }
 0x332   : > { %v2490_v30 = vpop.f32.mrf.mxu1 }
 0x333   : > { %v2379_v13 = vpop.f32.mrf.mxu0  ;;  %v2491_v14 = vadd.f32 %v2490_v30, %v2377_v44  ;;  %v2473_v44 = vadd.f32 %v2472_v10, %v2359_v9 }
 0x334   : > { %v2492_v45 = vpop.f32.mrf.mxu1 }
 0x335   : > { %v2383_v25 = vpop.f32.mrf.mxu0  ;;  %v2493_v2 = vadd.f32 %v2492_v45, %v2379_v13  ;;  %v2479_v13 = vadd.f32 %v2478_v35, %v2365_v20  ;;  %v2453_v35 = vadd.f32 %v4997_v47, %v4995_v37 }
 0x336   : > { %v2496_v61 = vpop.f32.mrf.mxu1 }
 0x337   : > { %v2385_v36 = vpop.f32.mrf.mxu0  ;;  %v2497_v22 = vadd.f32 %v2496_v61, %v2383_v25  ;;  %v2718_v39 = vpack.c.bf16 %v2493_v2, %v2489_v52  ;;  %v2481_v61 = vadd.f32 %v2480_v28, %v2367_v27  ;;  %v2706_v47 = vpack.c.bf16 %v2453_v35, %v2449_v55  ;;  %v5371_v2 = vld [vmem:[#allocation5_spill] sm:$0xff]  ;;  %v5110_v35 = vld [vmem:[%s5309_s6 + $0x10] sm:$0xff]  }
 0x338   : > { %v2498_v50 = vpop.f32.mrf.mxu1  ;;  %5384 = vst [vmem:[#allocation3_spill] sm:$0xff] %v5110_v35 }
 0x339   : > { %v2387_v41 = vpop.f32.mrf.mxu0  ;;  %v2499_v11 = vadd.f32 %v2498_v50, %v2385_v36 }
 0x33a   : > { %v2500_v40 = vpop.f32.mrf.mxu1 }
 0x33b   : > { %v2389_v26 = vpop.f32.mrf.mxu0  ;;  %v2501_v7 = vadd.f32 %v2500_v40, %v2387_v41  ;;  %v2487_v41 = vadd.f32 %v2486_v56, %v2373_v16 }
 0x33c   : > { %v2502_v34 = vpop.f32.mrf.mxu1 }
 0x33d   : > { %v2503_v32 = vadd.f32 %v2502_v34, %v2389_v26  ;;  %v3368_v38 = vpop.f32.mrf.mxu0  ;;  %v2720_v53 = vpack.c.bf16 %v2501_v7, %v2497_v22  ;;  %v2717_v57 = vpack.c.bf16 %v2491_v14, %v2487_v41  ;;  %v2715_v22 = vpack.c.bf16 %v2483_v15, %v2479_v13  ;;  %v5370_v34 = vld [vmem:[#allocation6_spill] sm:$0xff] }
 0x33e   : > { %v3432_v12 = vpop.f32.mrf.mxu1  ;;  %v2463_v15 = vadd.f32 %v5013_v5, %v5011_v48  ;;  %v2705_v26 = vpack.c.bf16 %v2451_v60, %v5369_v51  ;;  %v5117_v60 = vld [vmem:[%s5309_s6 + $0x18] sm:$0xff]  }
 0x33f   : > { %v2721_v46 = vpack.c.bf16 %v2503_v32, %v2499_v11  ;;  %v3369_v1 = vpop.f32.mrf.mxu0  ;;  %v5372_v11 = vpack.c.bf16 %v5370_v34, %v5371_v2  ;;  %5385 = vst [vmem:[#allocation6_spill] sm:$0xff] %v5117_v60 }
 0x340   : > { %v3370_v63 = vadd.f32 %v3369_v1, %v3368_v38  ;;  %v3433_v24 = vpop.f32.mrf.mxu1  ;;  %v2709_v27 = vpack.c.bf16 %v2463_v15, %v2459_v17  ;;  %v5383_v15 = vmov 0  }
 0x341   : > { %v3434_v21 = vadd.f32 %v3433_v24, %v3432_v12  ;;  %2851 = vmatprep.subr.bf16.mxu0 %v2721_v46  ;;  %v3371_v42 = vpop.f32.mrf.mxu0  ;;  %v2469_v46 = vadd.f32 %v5021_v0, %v5019_v4  ;;  %v2467_v4 = vadd.f32 %v5017_v3, %v5015_v59  ;;  %v2457_v3 = vadd.f32 %v5001_v54, %v4999_v49 }
 0x342   : > { %v3435_v40 = vpop.f32.mrf.mxu1  ;;  %2852 = vmatpush1.bf16.msra.mxu0 %v2720_v53 }
 0x343   : > { %v2637_v45 = vadd.f32 %v3434_v21, %v3370_v63  ;;  %2853 = vmatprep.subr.bf16.mxu0 %v2718_v39  ;;  %v3372_v25 = vpop.f32.mrf.mxu0  ;;  %v2471_v63 = vadd.f32 %v5025_v8, %v5023_v6  ;;  %v2714_v39 = vpack.c.bf16 %v2481_v61, %v2477_v33  ;;  %v2712_v12 = vpack.c.bf16 %v2473_v44, %v2469_v46  ;;  %v5374_v61 = vld [vmem:[#allocation9_spill] sm:$0xff]  ;;  %v5380_v46 = vld [vmem:[#allocation7_spill] sm:$0xff] }
 0x344   : > { %v3373_v32 = vadd.f32 %v3372_v25, %v3371_v42  ;;  %v3436_v43 = vpop.f32.mrf.mxu1  ;;  %v2708_v16 = vpack.c.bf16 %v2461_v18, %v2457_v3  ;;  %v5373_v25 = vld [vmem:[#allocation2_spill] sm:$0xff] }
 0x345   : > { %v3437_v1 = vadd.f32 %v3436_v43, %v3435_v40  ;;  %v3374_v38 = vpop.f32.mrf.mxu0  ;;  %v2711_v48 = vpack.c.bf16 %v2471_v63, %v2467_v4  ;;  %v5377_v43 = vld [vmem:[#allocation10_spill] sm:$0xff]  ;;  %v5103_v4 = vld [vmem:[%s5309_s6 + $0x8] sm:$0xff]  }
 0x346   : > { %v3438_v52 = vpop.f32.mrf.mxu1  ;;  %2854 = vmatpush1.bf16.msra.mxu0 %v2717_v57  ;;  %v5375_v57 = vpack.c.bf16 %v5373_v25, %v5374_v61 }
 0x347   : > { %v2640_v24 = vadd.f32 %v3437_v1, %v3373_v32  ;;  %2855 = vmatprep.subr.bf16.mxu0 %v2715_v22  ;;  %v3375_v53 = vpop.f32.mrf.mxu0  ;;  %v5376_v32 = vld [vmem:[#allocation11_spill] sm:$0xff] }
 0x348   : > { %v3376_v14 = vadd.f32 %v3375_v53, %v3374_v38  ;;  %v3439_v21 = vpop.f32.mrf.mxu1  ;;  %v5378_v44 = vpack.c.bf16 %v5376_v32, %v5377_v43 }
 0x349   : > { %v3440_v42 = vadd.f32 %v3439_v21, %v3438_v52  ;;  %v3377_v9 = vpop.f32.mrf.mxu0  ;;  %v5033_v10 = vpack.c.bf16 %v2640_v24, %v2637_v45  ;;  %v5379_v52 = vld [vmem:[#allocation8_spill] sm:$0xff] }
 0x34a   : > { %v3441_v0 = vpop.f32.mrf.mxu1  ;;  %2856 = vmatpush1.bf16.msra.mxu0 %v2714_v39  ;;  %v5381_v24 = vpack.c.bf16 %v5379_v52, %v5380_v46  ;;  %v5382_v39 = vld [vmem:[#allocation4_spill] sm:$0xff] }
 0x34b   : > { %v2645_v6 = vadd.f32 %v3440_v42, %v3376_v14  ;;  %2857 = vmatprep.subr.bf16.mxu0 %v2712_v12  ;;  %v3378_v8 = vpop.f32.mrf.mxu0 }
 0x34c   : > { %v3379_v5 = vadd.f32 %v3378_v8, %v3377_v9  ;;  %v3442_v20 = vpop.f32.mrf.mxu1 }
 0x34d   : > { %v3443_v28 = vadd.f32 %v3442_v20, %v3441_v0  ;;  %v3380_v59 = vpop.f32.mrf.mxu0 }
 0x34e   : > { %v3444_v31 = vpop.f32.mrf.mxu1  ;;  %2858 = vmatpush1.bf16.msra.mxu0 %v2711_v48 }
 0x34f   : > { %v2648_v62 = vadd.f32 %v3443_v28, %v3379_v5  ;;  %2859 = vmatprep.subr.bf16.mxu0 %v2709_v27  ;;  %v3381_v19 = vpop.f32.mrf.mxu0 }
 0x350   : > { %v3382_v56 = vadd.f32 %v3381_v19, %v3380_v59  ;;  %v3445_v37 = vpop.f32.mrf.mxu1 }
 0x351   : > { %v3446_v30 = vadd.f32 %v3445_v37, %v3444_v31  ;;  %v5049_v36 = vpop.f32.mrf.mxu0  ;;  %v5051_v50 = vpack.c.bf16 %v2648_v62, %v2645_v6 }
 0x352   : > { %v5053_v49 = vpop.f32.mrf.mxu1  ;;  %2860 = vmatpush1.bf16.msra.mxu0 %v2708_v16 }
 0x353   : > { %v5055_v54 = vadd.f32 %v3446_v30, %v3382_v56  ;;  %2861 = vmatprep.subr.bf16.mxu0 %v2706_v47  ;;  %v5057_v23 = vpop.f32.mrf.mxu0 }
 0x354   : > { %v5060_v58 = vpop.f32.mrf.mxu1 }
 0x355   : > { %v5062_v29 = vpop.f32.mrf.mxu0 }
 0x356   : > { %v5064_v7 = vpop.f32.mrf.mxu1  ;;  %2862 = vmatpush1.bf16.msra.mxu0 %v2705_v26 }
 0x357   : > { %2863 = vmatprep.subr.bf16.mxu0 %v5372_v11  ;;  %v5069_v41 = vpop.f32.mrf.mxu0 }
 0x358   : > { %v5071_v40 = vpop.f32.mrf.mxu1 }
 0x359   : > { %v5073_v13 = vpop.f32.mrf.mxu0 }
 0x35a   : > { %v5075_v45 = vpop.f32.mrf.mxu1  ;;  %2864 = vmatpush1.bf16.msra.mxu0 %v5375_v57 }
 0x35b   : > { %2865 = vmatprep.subr.bf16.mxu0 %v5378_v44  ;;  %v5083_v22 = vpop.f32.mrf.mxu0  ;;  %v3776_v44 = vld [vmem:[%s5309_s6 + $0x20] sm:$0xff]  }
 0x35c   : > { %v5085_v1 = vpop.f32.mrf.mxu1 }
 0x35d   : > { %v5087_v38 = vpop.f32.mrf.mxu0 }
 0x35e   : > { %v5089_v33 = vpop.f32.mrf.mxu1  ;;  %2866 = vmatpush1.bf16.msra.mxu0 %v5381_v24 }
 0x35f   : > { %v5094_v53 = vpop.f32.mrf.mxu0 }
 0x360   : > { %v5096_v63 = vpop.f32.mrf.mxu1 }
 0x361   : > { %2884 = vmatmul.mubr.bf16.vlgmr.msra.gmra.mxu0 %v5382_v39  ;;  %v3395_v14 = vpop.f32.mrf.mxu0 }
 0x362   : > { %v3459_v21 = vpop.f32.mrf.mxu1  ;;  %2893 = vmatprep.mubr.bf16.mxu0 %v5383_v15 }
 0x363   : > { %v3396_v12 = vpop.f32.mrf.mxu0 }
 0x364   : > { %v3460_v42 = vpop.f32.mrf.mxu1 }
 0x365   : > { %v3398_v9 = vpop.f32.mrf.mxu0 }
 0x366   : > { %v3462_v0 = vpop.f32.mrf.mxu1 }
 0x367   : > { %v3399_v17 = vpop.f32.mrf.mxu0 }
 0x368   : > { %v3463_v6 = vpop.f32.mrf.mxu1 }
 0x369   : > { %2894 = vmatmul.mubr.bf16.gmra.mxu0 %v5103_v4  ;;  %v3401_v8 = vpop.f32.mrf.mxu0 }
 0x36a   : > { %v3465_v18 = vpop.f32.mrf.mxu1  ;;  %2903 = vmatprep.mubr.bf16.mxu0 %v5383_v15 }
 0x36b   : > { %v3402_v48 = vpop.f32.mrf.mxu0 }
 0x36c   : > { %v3466_v5 = vpop.f32.mrf.mxu1  ;;  %v3403_v52 = vadd.f32 %v3402_v48, %v3401_v8  ;;  %v3394_v8 = vadd.f32 %v5094_v53, %v5087_v38  ;;  %v3388_v38 = vadd.f32 %v5069_v41, %v5062_v29  ;;  %v3778_v29 = vld [vmem:[%s5309_s6 + $0x30] sm:$0xff]  }
 0x36d   : > { %v3404_v20 = vpop.f32.mrf.mxu0  ;;  %v3467_v46 = vadd.f32 %v3466_v5, %v3465_v18  ;;  %v3458_v18 = vadd.f32 %v5096_v63, %v5089_v33  ;;  %v3452_v33 = vadd.f32 %v5071_v40, %v5064_v7 }
 0x36e   : > { %v3468_v27 = vpop.f32.mrf.mxu1 }
 0x36f   : > { %v3405_v28 = vpop.f32.mrf.mxu0  ;;  %v2669_v53 = vadd.f32 %v3458_v18, %v3394_v8  ;;  %v2661_v63 = vadd.f32 %v3452_v33, %v3388_v38 }
 0x370   : > { %v3469_v59 = vpop.f32.mrf.mxu1  ;;  %v3406_v57 = vadd.f32 %v3405_v28, %v3404_v20  ;;  %v3461_v20 = vadd.f32 %v3460_v42, %v3459_v21  ;;  %v3455_v21 = vadd.f32 %v5085_v1, %v5075_v45  ;;  %v3449_v45 = vadd.f32 %v5060_v58, %v5053_v49  ;;  %v3779_v49 = vld [vmem:[%s5309_s6 + $0x38] sm:$0xff]   ;;  %v5161_v58 = vpop.permute.xlu0 %2725 }
 0x371   : > { %2904 = vmatmul.mubr.bf16.gmra.mxu0 %v5110_v35  ;;  %v3407_v3 = vpop.f32.mrf.mxu0  ;;  %v3470_v32 = vadd.f32 %v3469_v59, %v3468_v27  ;;  %v3400_v35 = vadd.f32 %v3399_v17, %v3398_v9  ;;  %v2680_v27 = vadd.f32 %v3467_v46, %v3403_v52  ;;  %v3777_v9 = vld [vmem:[%s5309_s6 + $0x28] sm:$0xff]  }
 0x372   : > { %v3471_v31 = vpop.f32.mrf.mxu1  ;;  %2913 = vmatprep.mubr.bf16.mxu0 %v5383_v15 }
 0x373   : > { %v3408_v55 = vpop.f32.mrf.mxu0 }
 0x374   : > { %v3472_v62 = vpop.f32.mrf.mxu1  ;;  %v3409_v51 = vadd.f32 %v3408_v55, %v3407_v3  ;;  %v3464_v3 = vadd.f32 %v3463_v6, %v3462_v0 }
 0x375   : > { %v3410_v19 = vpop.f32.mrf.mxu0  ;;  %v3473_v26 = vadd.f32 %v3472_v62, %v3471_v31  ;;  %v2685_v31 = vadd.f32 %v3470_v32, %v3406_v57  ;;  %v3397_v62 = vadd.f32 %v3396_v12, %v3395_v14  ;;  %v3391_v14 = vadd.f32 %v5083_v22, %v5073_v13 }
 0x376   : > { %v3474_v16 = vpop.f32.mrf.mxu1  ;;  %v2677_v48 = vadd.f32 %v3464_v3, %v3400_v35  ;;  %v3385_v13 = vadd.f32 %v5057_v23, %v5049_v36  ;;  %v5387_v23 = vld [vmem:[#allocation6_spill] sm:$0xff]  ;;  %v5177_v35 = vpop.permute.xlu0 %2735 }
 0x377   : > { %v3411_v56 = vpop.f32.mrf.mxu0  ;;  %v2688_v24 = vadd.f32 %v3473_v26, %v3409_v51  ;;  %v2672_v12 = vadd.f32 %v3461_v20, %v3397_v62  ;;  %v2664_v22 = vadd.f32 %v3455_v21, %v3391_v14 }
 0x378   : > { %v3475_v37 = vpop.f32.mrf.mxu1  ;;  %v3412_v34 = vadd.f32 %v3411_v56, %v3410_v19  ;;  %v2716_v42 = vpack.c.bf16 %v2680_v27, %v2677_v48  ;;  %v2656_v7 = vadd.f32 %v3449_v45, %v3385_v13 }
 0x379   : > { %2914 = vmatmul.mubr.bf16.gmra.mxu0 %v5117_v60  ;;  %v3413_v47 = vpop.f32.mrf.mxu0  ;;  %v3476_v2 = vadd.f32 %v3475_v37, %v3474_v16  ;;  %v2719_v28 = vpack.c.bf16 %v2688_v24, %v2685_v31  ;;  %v2713_v1 = vpack.c.bf16 %v2672_v12, %v2669_v53  ;;  %v2710_v41 = vpack.c.bf16 %v2664_v22, %v2661_v63 }
 0x37a   : > { %v3477_v30 = vpop.f32.mrf.mxu1  ;;  %2923 = vmatprep.mubr.bf16.mxu0 %v5383_v15  ;;  %v2707_v36 = vpack.c.bf16 %v2656_v7, %v5055_v54  ;;  %v5386_v54 = vld [vmem:[#allocation3_spill] sm:$0xff]  ;;  %v5189_v26 = vpop.permute.xlu0 %2745 }
 0x37b   : > { %v3414_v11 = vpop.f32.mrf.mxu0  ;;  %v2693_v39 = vadd.f32 %v3476_v2, %v3412_v34 }
 0x37c   : > { %v3415_v25 = vadd.f32 %v3414_v11, %v3413_v47  ;;  %v3478_v61 = vpop.f32.mrf.mxu1 }
 0x37d   : > { %v3479_v43 = vadd.f32 %v3478_v61, %v3477_v30 }
 0x37e   : > { %v5201_v52 = vpop.permute.xlu0 %2755 }
 0x37f   : > { %v2696_v60 = vadd.f32 %v3479_v43, %v3415_v25 }
 0x381   : > { %2924 = vmatmul.mubr.bf16.gmra.mxu0 %v3776_v44  ;;  %v2722_v55 = vpack.c.bf16 %v2696_v60, %v2693_v39 }
 0x382   : > { %2933 = vmatprep.mubr.bf16.mxu0 %v5383_v15 }
 0x383   : > { %3496 = vmatprep.subr.bf16.mxu1 %v2722_v55 }
 0x384   : > { %3497 = vmatpush3.bf16.msra.mxu1 %v2722_v55 }
 0x385   : > { %3498 = vmatprep.subr.bf16.mxu1 %v2719_v28 }
 0x388   : > { %3499 = vmatpush3.bf16.msra.mxu1 %v2719_v28  ;;  %v5213_v28 = vpop.permute.xlu0 %2765 }
 0x389   : > { %2934 = vmatmul.mubr.bf16.gmra.mxu0 %v3777_v9  ;;  %3500 = vmatprep.subr.bf16.mxu1 %v2716_v42 }
 0x38a   : > { %2943 = vmatprep.mubr.bf16.mxu0 %v5383_v15 }
 0x38c   : > { %3501 = vmatpush3.bf16.msra.mxu1 %v2716_v42  ;;  %v5225_v33 = vpop.permute.xlu0 %2775 }
 0x38d   : > { %3502 = vmatprep.subr.bf16.mxu1 %v2713_v1 }
 0x390   : > { %3503 = vmatpush3.bf16.msra.mxu1 %v2713_v1 }
 0x391   : > { %2944 = vmatmul.mubr.bf16.gmra.mxu0 %v3778_v29  ;;  %3504 = vmatprep.subr.bf16.mxu1 %v2710_v41 }
 0x392   : > { %2953 = vmatprep.mubr.bf16.mxu0 %v5383_v15 }
 0x394   : > { %3505 = vmatpush3.bf16.msra.mxu1 %v2710_v41 }
 0x395   : > { %3506 = vmatprep.subr.bf16.mxu1 %v2707_v36 }
 0x398   : > { %3507 = vmatpush3.bf16.msra.mxu1 %v2707_v36  ;;  %v5237_v36 = vpop.permute.xlu0 %2785 }
 0x399   : > { %2954 = vmatmul.mubr.bf16.gmra.mxu0 %v3779_v49  ;;  %3508 = vmatprep.subr.bf16.mxu1 %v5051_v50 }
 0x39c   : > { %3509 = vmatpush3.bf16.msra.mxu1 %v5051_v50 }
 0x39d   : > { %3510 = vmatprep.subr.bf16.mxu1 %v5033_v10 }
 0x3a0   : > { %3511 = vmatpush3.bf16.msra.mxu1 %v5033_v10 }
 0x3a3   : > { %3513 = vmatmul.mubr.bf16.vlgmr.msra.gmra.mxu1 %v5103_v4  ;;  %v5171_v4 = vpop.permute.xlu1 %2730 }
 0x3a4   : > { %3516 = vmatprep.mubr.bf16.mxu1 %v5386_v54 }
 0x3a7   : > { %v5183_v56 = vpop.permute.xlu1 %2740 }
 0x3ab   : > { %3517 = vmatmul.mubr.bf16.gmra.mxu1 %v5387_v23  ;;  %v5195_v61 = vpop.permute.xlu1 %2750 }
 0x3ac   : > { %3520 = vmatprep.mubr.bf16.mxu1 %v3776_v44 }
 0x3af   : > { %v5207_v31 = vpop.permute.xlu1 %2760 }
 0x3b3   : > { %3521 = vmatmul.mubr.bf16.gmra.mxu1 %v3777_v9  ;;  %v5219_v14 = vpop.permute.xlu1 %2770 }
 0x3b4   : > { %3524 = vmatprep.mubr.bf16.mxu1 %v3778_v29 }
 0x3b7   : > { %v5231_v1 = vpop.permute.xlu1 %2780 }
 0x3bb   : > { %3525 = vmatmul.mubr.bf16.gmra.mxu1 %v3779_v49 }
 0x421   : > { %v2885_v10 = vpop.f32.mrf.mxu0 }
 0x422   : > { %v2886_v50 = vadd.f32 %v2885_v10, %v5161_v58 }
 0x423   : > { %v2887_v40 = vpop.f32.mrf.mxu0 }
 0x424   : > { %3061 = vst [vmem:[%s5166_s20] sm:$0xff] %v2886_v50  ;;  %v2888_v15 = vadd.f32 %v2887_v40, %v5161_v58  ;;  %v5243_v50 = vpop.permute.xlu1 %2790 }
 0x425   : > { %v2889_v0 = vpop.f32.mrf.mxu0 }
 0x426   : > { %3062 = vst [vmem:[%s5166_s20 + $0x8] sm:$0xff] %v2888_v15  ;;  %v2890_v17 = vadd.f32 %v2889_v0, %v5171_v4 }
 0x427   : > { %v2891_v6 = vpop.f32.mrf.mxu0 }
 0x428   : > { %3065 = vst [vmem:[%s5166_s20 + $0x18] sm:$0xff] %v2890_v17  ;;  %v2892_v5 = vadd.f32 %v2891_v6, %v5171_v4  ;;  %v2796_v6 = vpop.permute.xlu0 %2795 }
 0x429   : > { %v2895_v59 = vpop.f32.mrf.mxu0 }
 0x42a   : > { %3066 = vst [vmem:[%s5166_s20 + $0x20] sm:$0xff] %v2892_v5  ;;  %v2896_v19 = vadd.f32 %v2895_v59, %v5177_v35 }
 0x42b   : > { %v2897_v60 = vpop.f32.mrf.mxu0 }
 0x42c   : > { %3068 = vst [vmem:[%s5166_s20 + $0x30] sm:$0xff] %v2896_v19  ;;  %v2898_v16 = vadd.f32 %v2897_v60, %v5177_v35 }
 0x42d   : > { %v2899_v37 = vpop.f32.mrf.mxu0 }
 0x42e   : > { %3069 = vst [vmem:[%s5166_s20 + $0x38] sm:$0xff] %v2898_v16  ;;  %v2900_v47 = vadd.f32 %v2899_v37, %v5183_v56  ;;  %v2801_v16 = vpop.permute.xlu1 %2800 }
 0x42f   : > { %v2901_v30 = vpop.f32.mrf.mxu0 }
 0x430   : > { %3071 = vst [vmem:[%s5166_s20 + $0x48] sm:$0xff] %v2900_v47  ;;  %v2902_v51 = vadd.f32 %v2901_v30, %v5183_v56 }
 0x431   : > { %v2905_v34 = vpop.f32.mrf.mxu0 }
 0x432   : > { %3072 = vst [vmem:[%s5166_s20 + $0x50] sm:$0xff] %v2902_v51  ;;  %v2906_v2 = vadd.f32 %v2905_v34, %v5189_v26 }
 0x433   : > { %v2907_v11 = vpop.f32.mrf.mxu0 }
 0x434   : > { %3074 = vst [vmem:[%s5166_s20 + $0x60] sm:$0xff] %v2906_v2  ;;  %v2908_v25 = vadd.f32 %v2907_v11, %v5189_v26 }
 0x435   : > { %v2909_v57 = vpop.f32.mrf.mxu0 }
 0x436   : > { %3075 = vst [vmem:[%s5166_s20 + $0x68] sm:$0xff] %v2908_v25  ;;  %v2910_v32 = vadd.f32 %v2909_v57, %v5195_v61 }
 0x437   : > { %v2911_v43 = vpop.f32.mrf.mxu0 }
 0x438   : > { %3077 = vst [vmem:[%s5166_s20 + $0x78] sm:$0xff] %v2910_v32  ;;  %v2912_v44 = vadd.f32 %v2911_v43, %v5195_v61 }
 0x439   : > { %v2915_v46 = vpop.f32.mrf.mxu0 }
 0x43a   : > { %3078 = vst [vmem:[%s5166_s20 + $0x80] sm:$0xff] %v2912_v44  ;;  %v2916_v24 = vadd.f32 %v2915_v46, %v5201_v52 }
 0x43b   : > { %v2917_v39 = vpop.f32.mrf.mxu0 }
 0x43c   : > { %3080 = vst [vmem:[%s5166_s20 + $0x90] sm:$0xff] %v2916_v24  ;;  %v2918_v3 = vadd.f32 %v2917_v39, %v5201_v52 }
 0x43d   : > { %v2919_v55 = vpop.f32.mrf.mxu0 }
 0x43e   : > { %3081 = vst [vmem:[%s5166_s20 + $0x98] sm:$0xff] %v2918_v3  ;;  %v2920_v62 = vadd.f32 %v2919_v55, %v5207_v31 }
 0x43f   : > { %v2921_v20 = vpop.f32.mrf.mxu0 }
 0x440   : > { %3083 = vst [vmem:[%s5166_s20 + $0xa8] sm:$0xff] %v2920_v62  ;;  %v2922_v27 = vadd.f32 %v2921_v20, %v5207_v31 }
 0x441   : > { %v2925_v8 = vpop.f32.mrf.mxu0 }
 0x442   : > { %3084 = vst [vmem:[%s5166_s20 + $0xb0] sm:$0xff] %v2922_v27  ;;  %v2926_v18 = vadd.f32 %v2925_v8, %v5213_v28 }
 0x443   : > { %v2927_v48 = vpop.f32.mrf.mxu0 }
 0x444   : > { %3086 = vst [vmem:[%s5166_s20 + $0xc0] sm:$0xff] %v2926_v18  ;;  %v2928_v9 = vadd.f32 %v2927_v48, %v5213_v28 }
 0x445   : > { %v2929_v21 = vpop.f32.mrf.mxu0 }
 0x446   : > { %3087 = vst [vmem:[%s5166_s20 + $0xc8] sm:$0xff] %v2928_v9  ;;  %v2930_v12 = vadd.f32 %v2929_v21, %v5219_v14 }
 0x447   : > { %v2931_v42 = vpop.f32.mrf.mxu0 }
 0x448   : > { %3089 = vst [vmem:[%s5166_s20 + $0xd8] sm:$0xff] %v2930_v12  ;;  %v2932_v38 = vadd.f32 %v2931_v42, %v5219_v14 }
 0x449   : > { %v2935_v53 = vpop.f32.mrf.mxu0 }
 0x44a   : > { %3090 = vst [vmem:[%s5166_s20 + $0xe0] sm:$0xff] %v2932_v38  ;;  %v2936_v13 = vadd.f32 %v2935_v53, %v5225_v33 }
 0x44b   : > { %v2937_v45 = vpop.f32.mrf.mxu0 }
 0x44c   : > { %3092 = vst [vmem:[%s5166_s20 + $0xf0] sm:$0xff] %v2936_v13  ;;  %v2938_v22 = vadd.f32 %v2937_v45, %v5225_v33 }
 0x44d   : > { %v2939_v63 = vpop.f32.mrf.mxu0 }
 0x44e   : > { %3093 = vst [vmem:[%s5166_s20 + $0xf8] sm:$0xff] %v2938_v22  ;;  %v2940_v29 = vadd.f32 %v2939_v63, %v5231_v1 }
 0x44f   : > { %v2941_v7 = vpop.f32.mrf.mxu0 }
 0x450   : > { %3095 = vst [vmem:[%s5166_s20 + $0x108] sm:$0xff] %v2940_v29  ;;  %v2942_v41 = vadd.f32 %v2941_v7, %v5231_v1 }
 0x451   : > { %v2945_v49 = vpop.f32.mrf.mxu0 }
 0x452   : > { %3096 = vst [vmem:[%s5166_s20 + $0x110] sm:$0xff] %v2942_v41  ;;  %v2946_v54 = vadd.f32 %v2945_v49, %v5237_v36 }
 0x453   : > { %v2947_v23 = vpop.f32.mrf.mxu0 }
 0x454   : > { %3098 = vst [vmem:[%s5166_s20 + $0x120] sm:$0xff] %v2946_v54  ;;  %v2948_v10 = vadd.f32 %v2947_v23, %v5237_v36 }
 0x455   : > { %v2949_v40 = vpop.f32.mrf.mxu0 }
 0x456   : > { %3099 = vst [vmem:[%s5166_s20 + $0x128] sm:$0xff] %v2948_v10  ;;  %v2950_v15 = vadd.f32 %v2949_v40, %v5243_v50 }
 0x457   : > { %v2951_v0 = vpop.f32.mrf.mxu0 }
 0x458   : > { %3101 = vst [vmem:[%s5166_s20 + $0x138] sm:$0xff] %v2950_v15  ;;  %v2952_v17 = vadd.f32 %v2951_v0, %v5243_v50 }
 0x459   : > { %v2955_v5 = vpop.f32.mrf.mxu0 }
 0x45a   : > { %3102 = vst [vmem:[%s5166_s20 + $0x140] sm:$0xff] %v2952_v17  ;;  %v2956_v59 = vadd.f32 %v2955_v5, %v2796_v6 }
 0x45b   : > { %v2957_v19 = vpop.f32.mrf.mxu0 }
 0x45c   : > { %3104 = vst [vmem:[%s5166_s20 + $0x150] sm:$0xff] %v2956_v59  ;;  %v2958_v60 = vadd.f32 %v2957_v19, %v2796_v6 }
 0x45d   : > { %v2959_v37 = vpop.f32.mrf.mxu0 }
 0x45e   : > { %3105 = vst [vmem:[%s5166_s20 + $0x158] sm:$0xff] %v2958_v60  ;;  %v2960_v47 = vadd.f32 %v2959_v37, %v2801_v16 }
 0x45f   : > { %v2961_v30 = vpop.f32.mrf.mxu0 }
 0x460   : > { %3107 = vst [vmem:[%s5166_s20 + $0x168] sm:$0xff] %v2960_v47  ;;  %v2962_v51 = vadd.f32 %v2961_v30, %v2801_v16 }
 0x462   : > { %3108 = vst [vmem:[%s5166_s20 + $0x170] sm:$0xff] %v2962_v51 }
 0x463   : > { %v3514_v34 = vpop.f32.mrf.mxu1 }
 0x464   : > { %v3007_v2 = vadd.f32 %v3514_v34, %v5177_v35 }
 0x465   : > { %v2998_v11 = vpop.f32.mrf.mxu1 }
 0x466   : > { %3070 = vst.msk [vmem:[%s5166_s20 + $0x40] sm:$0xff] %vm3063_vm0, %v3007_v2  ;;  %v2999_v25 = vadd.f32 %v2998_v11, %v5161_v58 }
 0x467   : > { %v3515_v57 = vpop.f32.mrf.mxu1 }
 0x468   : > { %3064 = vst.msk [vmem:[%s5166_s20 + $0x10] sm:$0xff] %vm3063_vm0, %v2999_v25  ;;  %v3010_v32 = vadd.f32 %v3515_v57, %v5183_v56 }
 0x469   : > { %v3001_v43 = vpop.f32.mrf.mxu1 }
 0x46a   : > { %3073 = vst.msk [vmem:[%s5166_s20 + $0x58] sm:$0xff] %vm3063_vm0, %v3010_v32  ;;  %v3002_v44 = vadd.f32 %v3001_v43, %v5171_v4 }
 0x46b   : > { %v3518_v46 = vpop.f32.mrf.mxu1 }
 0x46c   : > { %3067 = vst.msk [vmem:[%s5166_s20 + $0x28] sm:$0xff] %vm3063_vm0, %v3002_v44  ;;  %v3023_v35 = vadd.f32 %v3518_v46, %v5201_v52 }
 0x46d   : > { %v3014_v24 = vpop.f32.mrf.mxu1 }
 0x46e   : > { %3082 = vst.msk [vmem:[%s5166_s20 + $0xa0] sm:$0xff] %vm3063_vm0, %v3023_v35  ;;  %v3015_v58 = vadd.f32 %v3014_v24, %v5189_v26 }
 0x46f   : > { %v3519_v39 = vpop.f32.mrf.mxu1 }
 0x470   : > { %3076 = vst.msk [vmem:[%s5166_s20 + $0x70] sm:$0xff] %vm3063_vm0, %v3015_v58  ;;  %v3026_v56 = vadd.f32 %v3519_v39, %v5207_v31 }
 0x471   : > { %v3017_v3 = vpop.f32.mrf.mxu1 }
 0x472   : > { %3085 = vst.msk [vmem:[%s5166_s20 + $0xb8] sm:$0xff] %vm3063_vm0, %v3026_v56  ;;  %v3018_v4 = vadd.f32 %v3017_v3, %v5195_v61 }
 0x473   : > { %v3522_v55 = vpop.f32.mrf.mxu1 }
 0x474   : > { %3079 = vst.msk [vmem:[%s5166_s20 + $0x88] sm:$0xff] %vm3063_vm0, %v3018_v4  ;;  %v3039_v52 = vadd.f32 %v3522_v55, %v5225_v33 }
 0x475   : > { %v3030_v62 = vpop.f32.mrf.mxu1 }
 0x476   : > { %3094 = vst.msk [vmem:[%s5166_s20 + $0x100] sm:$0xff] %vm3063_vm0, %v3039_v52  ;;  %v3031_v26 = vadd.f32 %v3030_v62, %v5213_v28 }
 0x477   : > { %v3523_v20 = vpop.f32.mrf.mxu1 }
 0x478   : > { %3088 = vst.msk [vmem:[%s5166_s20 + $0xd0] sm:$0xff] %vm3063_vm0, %v3031_v26  ;;  %v3042_v31 = vadd.f32 %v3523_v20, %v5231_v1 }
 0x479   : > { %v3033_v61 = vpop.f32.mrf.mxu1 }
 0x47a   : > { %3097 = vst.msk [vmem:[%s5166_s20 + $0x118] sm:$0xff] %vm3063_vm0, %v3042_v31  ;;  %v3034_v27 = vadd.f32 %v3033_v61, %v5219_v14 }
 0x47b   : > { %v3526_v8 = vpop.f32.mrf.mxu1 }
 0x47c   : > { %3091 = vst.msk [vmem:[%s5166_s20 + $0xe8] sm:$0xff] %vm3063_vm0, %v3034_v27  ;;  %v3055_v18 = vadd.f32 %v3526_v8, %v2796_v6 }
 0x47d   : > { %v3046_v48 = vpop.f32.mrf.mxu1 }
 0x47e   : > { %3106 = vst.msk [vmem:[%s5166_s20 + $0x160] sm:$0xff] %vm3063_vm0, %v3055_v18  ;;  %v3047_v28 = vadd.f32 %v3046_v48, %v5237_v36 }
 0x47f   : > { %v3527_v9 = vpop.f32.mrf.mxu1 }
 0x480   : > { %3100 = vst.msk [vmem:[%s5166_s20 + $0x130] sm:$0xff] %vm3063_vm0, %v3047_v28  ;;  %v3058_v21 = vadd.f32 %v3527_v9, %v2801_v16 }
 0x481   : > { %v3049_v12 = vpop.f32.mrf.mxu1 }
 0x482   : > { %3109 = vst.msk [vmem:[%s5166_s20 + $0x178] sm:$0xff] %vm3063_vm0, %v3058_v21  ;;  %v3050_v42 = vadd.f32 %v3049_v12, %v5243_v50 }
 0x484   : > { %3103 = vst.msk [vmem:[%s5166_s20 + $0x148] sm:$0xff] %vm3063_vm0, %v3050_v42 }
 0x485 PF: > { %s18_s27 = sadd.s32 1, %s3786_s27  }
 0x486   : > { %p15_p4 = scmp.ge.s32.totalorder %s18_s27, 4  }
 0x488   :  { %17 = sbr.rel (!%p15_p4) target bundleno = 1 (0x1), region = 82 }

</bundles_post_ra>
